<compile_context>
chip_gen: v7x
topology: tpu7x:2x2x1
jax: 0.10.0
libtpu: 0.0.40
codegen_flags: <defaults>
</compile_context>

<pallas_src>
import jax
import jax.numpy as jnp
from jax.experimental import pallas as pl
from jax.experimental.pallas import tpu as pltpu


def pack_params(w1, b1, w2, b2):
    """One-time packing of all weights/biases into a single small array.

    Layout (collision-free for any F, H, O):
      rows [0:F)        : w1  (F, H)
      row  F            : b1  (H,)
      rows [F+1:F+1+H)  : w2  (H, O)
      row  F+1+H        : b2  (O,)
    """
    F, H = w1.shape
    O = w2.shape[1]
    PW = max(H, O)
    p = jnp.zeros((F + H + 2, PW), jnp.float32)
    p = p.at[0:F, 0:H].set(w1.astype(jnp.float32))
    p = p.at[F, 0:H].set(b1.reshape(-1).astype(jnp.float32))
    p = p.at[F + 1:F + 1 + H, 0:O].set(w2.astype(jnp.float32))
    p = p.at[F + 1 + H, 0:O].set(b2.reshape(-1).astype(jnp.float32))
    return p


def make_net_forward(n_feature, n_hidden, n_output):
    F, H, O = n_feature, n_hidden, n_output

    def mlp_kernel(x_ref, p_ref, o_ref):
        x = x_ref[...]                       # (N, F)  float32
        p = p_ref[...]                       # (F+H+2, max(H,O))
        w1 = p[0:F, 0:H]                     # (F, H)
        b1 = p[F:F + 1, 0:H]                 # (1, H)
        w2 = p[F + 1:F + 1 + H, 0:O]         # (H, O)
        b2 = p[F + 1 + H:F + 2 + H, 0:O]     # (1, O)

        # Layer 1: h = relu(x @ w1 + b1) as F broadcast FMAs on the VPU
        # (K=F=2 is far too small for the MXU).
        acc = b1 + x[:, 0:1] * w1[0:1, :]
        for f in range(1, F):
            acc = acc + x[:, f:f + 1] * w1[f:f + 1, :]
        h = jnp.maximum(acc, 0.0)            # (N, H)

        # Layer 2: y = h @ w2 + b2 as H broadcast FMAs, pairwise tree-summed
        # to keep the dependent-add chain short (~log2(H) instead of H).
        terms = [h[:, j:j + 1] * w2[j:j + 1, :] for j in range(H)]
        while len(terms) > 1:
            nxt = [terms[i] + terms[i + 1] for i in range(0, len(terms) - 1, 2)]
            if len(terms) % 2:
                nxt.append(terms[-1])
            terms = nxt
        o_ref[...] = terms[0] + b2           # (N, O)  natural orientation

    @jax.jit
    def forward(x, params):
        N = x.shape[0]
        return pl.pallas_call(
            mlp_kernel,
            out_shape=jax.ShapeDtypeStruct((N, O), jnp.float32),
            in_specs=[
                pl.BlockSpec(memory_space=pltpu.MemorySpace.VMEM),
                pl.BlockSpec(memory_space=pltpu.MemorySpace.VMEM),
            ],
            out_specs=pl.BlockSpec(memory_space=pltpu.MemorySpace.VMEM),
        )(x.astype(jnp.float32), params)

    return forward


def init_linear(key, fan_in, fan_out):
    # Mimic torch.nn.Linear default init: U(-1/sqrt(fan_in), 1/sqrt(fan_in)).
    kw, kb = jax.random.split(key)
    bound = 1.0 / (fan_in ** 0.5)
    w = jax.random.uniform(kw, (fan_in, fan_out), jnp.float32, -bound, bound)
    b = jax.random.uniform(kb, (1, fan_out), jnp.float32, -bound, bound)
    return w, b


if __name__ == "__main__":
    key = jax.random.PRNGKey(0)
    k_data0, k_data1, k_l1, k_l2 = jax.random.split(key, 4)

    n_feature, n_hidden, n_output = 2, 10, 2
    n_per_class = 100

    # Synthetic data mirroring the torch script: two Gaussian blobs at +/-2.
    x0 = 2.0 + jax.random.normal(k_data0, (n_per_class, n_feature), jnp.float32)
    x1 = -2.0 + jax.random.normal(k_data1, (n_per_class, n_feature), jnp.float32)
    x = jnp.concatenate([x0, x1], axis=0)            # (200, 2) float32

    w1, b1 = init_linear(k_l1, n_feature, n_hidden)  # (2, 10), (1, 10)
    w2, b2 = init_linear(k_l2, n_hidden, n_output)   # (10, 2), (1, 2)

    # One-time parameter packing (hoisted out of the per-call path).
    params = jax.block_until_ready(pack_params(w1, b1, w2, b2))

    forward = make_net_forward(n_feature, n_hidden, n_output)
    y = forward(x, params)
    jax.block_until_ready(y)

    # Sanity check against plain-JAX reference (same math as the nn.Linear chain).
    ref = jnp.maximum(x @ w1 + b1, 0.0) @ w2 + b2
    assert y.shape == (2 * n_per_class, n_output)
    assert jnp.allclose(y, ref, atol=1e-5, rtol=1e-5)

    print("KERNEL_OK")
</pallas_src>

<mosaic_0001>
module attributes {stable_mosaic.version = 11 : i64} {
  func.func @mlp_kernel(%arg0: memref<200x2xf32, #tpu.memory_space<vmem>>, %arg1: memref<14x10xf32, #tpu.memory_space<vmem>>, %arg2: memref<200x2xf32, #tpu.memory_space<vmem>>) attributes {dimension_semantics = [], scalar_prefetch = 0 : i64, scratch_operands = 0 : i64, tpu.core_type = #tpu.core_type<tc>} {
    %c0 = arith.constant 0 : index
    %c0_0 = arith.constant 0 : index
    %0 = vector.load %arg0[%c0, %c0_0] : memref<200x2xf32, #tpu.memory_space<vmem>>, vector<200x2xf32>
    %c0_1 = arith.constant 0 : index
    %c0_2 = arith.constant 0 : index
    %1 = vector.load %arg1[%c0_1, %c0_2] : memref<14x10xf32, #tpu.memory_space<vmem>>, vector<14x10xf32>
    %2 = vector.extract_strided_slice %1 {offsets = [0, 0], sizes = [2, 10], strides = [1, 1]} : vector<14x10xf32> to vector<2x10xf32>
    %3 = vector.extract_strided_slice %1 {offsets = [2, 0], sizes = [1, 10], strides = [1, 1]} : vector<14x10xf32> to vector<1x10xf32>
    %4 = vector.extract_strided_slice %1 {offsets = [3, 0], sizes = [10, 2], strides = [1, 1]} : vector<14x10xf32> to vector<10x2xf32>
    %5 = vector.extract_strided_slice %1 {offsets = [13, 0], sizes = [1, 2], strides = [1, 1]} : vector<14x10xf32> to vector<1x2xf32>
    %6 = vector.extract_strided_slice %0 {offsets = [0, 0], sizes = [200, 1], strides = [1, 1]} : vector<200x2xf32> to vector<200x1xf32>
    %7 = vector.extract_strided_slice %2 {offsets = [0, 0], sizes = [1, 10], strides = [1, 1]} : vector<2x10xf32> to vector<1x10xf32>
    %8 = vector.broadcast %6 : vector<200x1xf32> to vector<200x10xf32>
    %9 = vector.broadcast %7 : vector<1x10xf32> to vector<200x10xf32>
    %10 = arith.mulf %8, %9 : vector<200x10xf32>
    %11 = vector.broadcast %3 : vector<1x10xf32> to vector<200x10xf32>
    %12 = arith.addf %11, %10 : vector<200x10xf32>
    %13 = vector.extract_strided_slice %0 {offsets = [0, 1], sizes = [200, 1], strides = [1, 1]} : vector<200x2xf32> to vector<200x1xf32>
    %14 = vector.extract_strided_slice %2 {offsets = [1, 0], sizes = [1, 10], strides = [1, 1]} : vector<2x10xf32> to vector<1x10xf32>
    %15 = vector.broadcast %13 : vector<200x1xf32> to vector<200x10xf32>
    %16 = vector.broadcast %14 : vector<1x10xf32> to vector<200x10xf32>
    %17 = arith.mulf %15, %16 : vector<200x10xf32>
    %18 = arith.addf %12, %17 : vector<200x10xf32>
    %cst = arith.constant 0.000000e+00 : f32
    %19 = vector.broadcast %cst : f32 to vector<200x10xf32>
    %20 = arith.maximumf %18, %19 : vector<200x10xf32>
    %21 = vector.extract_strided_slice %20 {offsets = [0, 0], sizes = [200, 1], strides = [1, 1]} : vector<200x10xf32> to vector<200x1xf32>
    %22 = vector.extract_strided_slice %4 {offsets = [0, 0], sizes = [1, 2], strides = [1, 1]} : vector<10x2xf32> to vector<1x2xf32>
    %23 = vector.broadcast %21 : vector<200x1xf32> to vector<200x2xf32>
    %24 = vector.broadcast %22 : vector<1x2xf32> to vector<200x2xf32>
    %25 = arith.mulf %23, %24 : vector<200x2xf32>
    %26 = vector.extract_strided_slice %20 {offsets = [0, 1], sizes = [200, 1], strides = [1, 1]} : vector<200x10xf32> to vector<200x1xf32>
    %27 = vector.extract_strided_slice %4 {offsets = [1, 0], sizes = [1, 2], strides = [1, 1]} : vector<10x2xf32> to vector<1x2xf32>
    %28 = vector.broadcast %26 : vector<200x1xf32> to vector<200x2xf32>
    %29 = vector.broadcast %27 : vector<1x2xf32> to vector<200x2xf32>
    %30 = arith.mulf %28, %29 : vector<200x2xf32>
    %31 = vector.extract_strided_slice %20 {offsets = [0, 2], sizes = [200, 1], strides = [1, 1]} : vector<200x10xf32> to vector<200x1xf32>
    %32 = vector.extract_strided_slice %4 {offsets = [2, 0], sizes = [1, 2], strides = [1, 1]} : vector<10x2xf32> to vector<1x2xf32>
    %33 = vector.broadcast %31 : vector<200x1xf32> to vector<200x2xf32>
    %34 = vector.broadcast %32 : vector<1x2xf32> to vector<200x2xf32>
    %35 = arith.mulf %33, %34 : vector<200x2xf32>
    %36 = vector.extract_strided_slice %20 {offsets = [0, 3], sizes = [200, 1], strides = [1, 1]} : vector<200x10xf32> to vector<200x1xf32>
    %37 = vector.extract_strided_slice %4 {offsets = [3, 0], sizes = [1, 2], strides = [1, 1]} : vector<10x2xf32> to vector<1x2xf32>
    %38 = vector.broadcast %36 : vector<200x1xf32> to vector<200x2xf32>
    %39 = vector.broadcast %37 : vector<1x2xf32> to vector<200x2xf32>
    %40 = arith.mulf %38, %39 : vector<200x2xf32>
    %41 = vector.extract_strided_slice %20 {offsets = [0, 4], sizes = [200, 1], strides = [1, 1]} : vector<200x10xf32> to vector<200x1xf32>
    %42 = vector.extract_strided_slice %4 {offsets = [4, 0], sizes = [1, 2], strides = [1, 1]} : vector<10x2xf32> to vector<1x2xf32>
    %43 = vector.broadcast %41 : vector<200x1xf32> to vector<200x2xf32>
    %44 = vector.broadcast %42 : vector<1x2xf32> to vector<200x2xf32>
    %45 = arith.mulf %43, %44 : vector<200x2xf32>
    %46 = vector.extract_strided_slice %20 {offsets = [0, 5], sizes = [200, 1], strides = [1, 1]} : vector<200x10xf32> to vector<200x1xf32>
    %47 = vector.extract_strided_slice %4 {offsets = [5, 0], sizes = [1, 2], strides = [1, 1]} : vector<10x2xf32> to vector<1x2xf32>
    %48 = vector.broadcast %46 : vector<200x1xf32> to vector<200x2xf32>
    %49 = vector.broadcast %47 : vector<1x2xf32> to vector<200x2xf32>
    %50 = arith.mulf %48, %49 : vector<200x2xf32>
    %51 = vector.extract_strided_slice %20 {offsets = [0, 6], sizes = [200, 1], strides = [1, 1]} : vector<200x10xf32> to vector<200x1xf32>
    %52 = vector.extract_strided_slice %4 {offsets = [6, 0], sizes = [1, 2], strides = [1, 1]} : vector<10x2xf32> to vector<1x2xf32>
    %53 = vector.broadcast %51 : vector<200x1xf32> to vector<200x2xf32>
    %54 = vector.broadcast %52 : vector<1x2xf32> to vector<200x2xf32>
    %55 = arith.mulf %53, %54 : vector<200x2xf32>
    %56 = vector.extract_strided_slice %20 {offsets = [0, 7], sizes = [200, 1], strides = [1, 1]} : vector<200x10xf32> to vector<200x1xf32>
    %57 = vector.extract_strided_slice %4 {offsets = [7, 0], sizes = [1, 2], strides = [1, 1]} : vector<10x2xf32> to vector<1x2xf32>
    %58 = vector.broadcast %56 : vector<200x1xf32> to vector<200x2xf32>
    %59 = vector.broadcast %57 : vector<1x2xf32> to vector<200x2xf32>
    %60 = arith.mulf %58, %59 : vector<200x2xf32>
    %61 = vector.extract_strided_slice %20 {offsets = [0, 8], sizes = [200, 1], strides = [1, 1]} : vector<200x10xf32> to vector<200x1xf32>
    %62 = vector.extract_strided_slice %4 {offsets = [8, 0], sizes = [1, 2], strides = [1, 1]} : vector<10x2xf32> to vector<1x2xf32>
    %63 = vector.broadcast %61 : vector<200x1xf32> to vector<200x2xf32>
    %64 = vector.broadcast %62 : vector<1x2xf32> to vector<200x2xf32>
    %65 = arith.mulf %63, %64 : vector<200x2xf32>
    %66 = vector.extract_strided_slice %20 {offsets = [0, 9], sizes = [200, 1], strides = [1, 1]} : vector<200x10xf32> to vector<200x1xf32>
    %67 = vector.extract_strided_slice %4 {offsets = [9, 0], sizes = [1, 2], strides = [1, 1]} : vector<10x2xf32> to vector<1x2xf32>
    %68 = vector.broadcast %66 : vector<200x1xf32> to vector<200x2xf32>
    %69 = vector.broadcast %67 : vector<1x2xf32> to vector<200x2xf32>
    %70 = arith.mulf %68, %69 : vector<200x2xf32>
    %71 = arith.addf %25, %30 : vector<200x2xf32>
    %72 = arith.addf %35, %40 : vector<200x2xf32>
    %73 = arith.addf %45, %50 : vector<200x2xf32>
    %74 = arith.addf %55, %60 : vector<200x2xf32>
    %75 = arith.addf %65, %70 : vector<200x2xf32>
    %76 = arith.addf %71, %72 : vector<200x2xf32>
    %77 = arith.addf %73, %74 : vector<200x2xf32>
    %78 = arith.addf %76, %77 : vector<200x2xf32>
    %79 = arith.addf %78, %75 : vector<200x2xf32>
    %80 = vector.broadcast %5 : vector<1x2xf32> to vector<200x2xf32>
    %81 = arith.addf %79, %80 : vector<200x2xf32>
    %c0_3 = arith.constant 0 : index
    %c0_4 = arith.constant 0 : index
    %82 = vector.load %arg2[%c0_3, %c0_4] : memref<200x2xf32, #tpu.memory_space<vmem>>, vector<200x2xf32>
    tpu.vector_store %arg2[%c0_3, %c0_4], %81 {strides = array<i32>} : memref<200x2xf32, #tpu.memory_space<vmem>>, vector<200x2xf32>,
    return
  }
}

</mosaic_0001>

<bundles_post_ra>
// kernel: forward.1
= control target key start
LH: loop header
LB: loop body
LE: loop exit
PB: predicated region body
PF: predicated region fallthrough
CT: control target
= control target key end

     0   :  { %v2033_v0 = vmov 1   ;;  %v2034_v1 = vmov 0   ;;  %v163_v45 = vlaneseq  ;;  %vm1969_vm0 = vcmask 15360   ;;  %s3824_s0 = inlined_call_operand.vmem [shape: f32[200,2], index: 0, kind: input, shape index: {}]   ;;  %s3825_s1 = inlined_call_operand.vmem [shape: f32[14,10], index: 1, kind: input, shape index: {}]   ;;  %s3826_s2 = inlined_call_operand.vmem [shape: f32[200,2], index: 2, kind: output, shape index: {}]  }
   0x1   :  { %2011 = vset.pattern.permute.xlu0 %v2033_v0  ;;  %2009 = vset.pattern.permute.xlu1 %v2034_v1  ;;  %v13_v2 = vld [vmem:[%s3824_s0 + $0x10] sm:$0xff]  ;;  %v12_v3 = vld [vmem:[%s3824_s0 + $0x8] sm:$0xff]  ;;  %v14_v4 = vld [vmem:[%s3824_s0 + $0x18] sm:$0xff] }
   0x2   :  { %50 = vperm.xlu1 %2009, %v13_v2   ;;  %226 = vperm.xlu0 %2011, %v12_v3   ;;  %v15_v5 = vld [vmem:[%s3824_s0 + $0x20] sm:$0xff]  ;;  %v16_v6 = vld [vmem:[%s3824_s0 + $0x28] sm:$0xff]  ;;  %v17_v7 = vld [vmem:[%s3824_s0 + $0x30] sm:$0xff]  ;;  %v2166_v48 = vshrl.u32 %v163_v45, 7 }
   0x3   :  { %v18_v8 = vld [vmem:[%s3824_s0 + $0x38] sm:$0xff]  ;;  %v19_v9 = vld [vmem:[%s3824_s0 + $0x40] sm:$0xff]  ;;  %v20_v10 = vld [vmem:[%s3824_s0 + $0x48] sm:$0xff] }
   0x4   :  { %v21_v11 = vld [vmem:[%s3824_s0 + $0x50] sm:$0xff]  ;;  %v22_v12 = vld [vmem:[%s3824_s0 + $0x58] sm:$0xff]  ;;  %v23_v13 = vld [vmem:[%s3824_s0 + $0x60] sm:$0xff]  ;;  %v3829_v51 = vsub.s32 0, %v2166_v48  ;;  %v3828_v53 = vsub.s32 1, %v2166_v48  ;;  %v3827_v57 = vsub.s32 2, %v2166_v48 }
   0x5   :  { %v24_v14 = vld [vmem:[%s3824_s0 + $0x68] sm:$0xff]  ;;  %v25_v15 = vld [vmem:[%s3824_s0 + $0x70] sm:$0xff]  ;;  %v26_v16 = vld [vmem:[%s3824_s0 + $0x78] sm:$0xff] }
   0x6   :  { %55 = vperm.xlu1 %2009, %v14_v4   ;;  %238 = vperm.xlu0 %2011, %v15_v5   ;;  %v27_v17 = vld [vmem:[%s3824_s0 + $0x80] sm:$0xff]  ;;  %v28_v18 = vld [vmem:[%s3824_s0 + $0x88] sm:$0xff]  ;;  %v29_v19 = vld [vmem:[%s3824_s0 + $0x90] sm:$0xff] }
   0x7   :  { %v30_v20 = vld [vmem:[%s3824_s0 + $0x98] sm:$0xff]  ;;  %v31_v21 = vld [vmem:[%s3824_s0 + $0xa0] sm:$0xff]  ;;  %v32_v22 = vld [vmem:[%s3824_s0 + $0xa8] sm:$0xff] }
   0x8   :  { %v33_v23 = vld [vmem:[%s3824_s0 + $0xb0] sm:$0xff]  ;;  %v34_v24 = vld [vmem:[%s3824_s0 + $0xb8] sm:$0xff]  ;;  %v35_v25 = vld [vmem:[%s3824_s0 + $0xc0] sm:$0xff] }
   0x9   :  { %v11_v26 = vld [vmem:[%s3824_s0] sm:$0xff] }
   0xa   :  { %65 = vperm.xlu1 %2009, %v16_v6   ;;  %246 = vperm.xlu0 %2011, %v17_v7   ;;  %v2176_v52 = vld [vmem:[%s3825_s1] sm:$0xff] }
   0xb   :  { %v2186_v56 = vrot.slane %v2176_v52, %v3829_v51  ;;  %v2192_v58 = vrot.slane %v2176_v52, %v3828_v53  ;;  %v2197_v59 = vrot.slane %v2176_v52, %v3827_v57  ;;  %v2037_v53 = vmov 4  }
   0xe   :  { %75 = vperm.xlu1 %2009, %v18_v8   ;;  %254 = vperm.xlu0 %2011, %v19_v9  }
  0x12   :  { %85 = vperm.xlu1 %2009, %v20_v10   ;;  %262 = vperm.xlu0 %2011, %v21_v11  }
  0x16   :  { %95 = vperm.xlu1 %2009, %v22_v12   ;;  %270 = vperm.xlu0 %2011, %v23_v13  }
  0x1a   :  { %105 = vperm.xlu1 %2009, %v24_v14   ;;  %278 = vperm.xlu0 %2011, %v25_v15  }
  0x1e   :  { %115 = vperm.xlu1 %2009, %v26_v16   ;;  %286 = vperm.xlu0 %2011, %v27_v17  }
  0x22   :  { %125 = vperm.xlu1 %2009, %v28_v18   ;;  %294 = vperm.xlu0 %2011, %v29_v19  }
  0x26   :  { %135 = vperm.xlu1 %2009, %v30_v20   ;;  %302 = vperm.xlu0 %2011, %v31_v21  }
  0x2a   :  { %145 = vperm.xlu1 %2009, %v32_v22   ;;  %310 = vperm.xlu0 %2011, %v33_v23  }
  0x2e   :  { %155 = vperm.xlu1 %2009, %v34_v24   ;;  %318 = vperm.xlu0 %2011, %v35_v25  }
  0x32   :  { %2010 = vset.pattern.permute.xlu1 %v2033_v0  ;;  %2012 = vset.pattern.permute.xlu0 %v2034_v1 }
  0x33   :  { %40 = vperm.xlu0 %2012, %v11_v26   ;;  %222 = vperm.xlu1 %2010, %v11_v26  }
  0x37   :  { %45 = vperm.xlu0 %2012, %v12_v3   ;;  %230 = vperm.xlu1 %2010, %v13_v2  }
  0x3b   :  { %60 = vperm.xlu0 %2012, %v15_v5   ;;  %234 = vperm.xlu1 %2010, %v14_v4  }
  0x3f   :  { %70 = vperm.xlu0 %2012, %v17_v7   ;;  %242 = vperm.xlu1 %2010, %v16_v6  }
  0x43   :  { %80 = vperm.xlu0 %2012, %v19_v9   ;;  %250 = vperm.xlu1 %2010, %v18_v8  }
  0x47   :  { %90 = vperm.xlu0 %2012, %v21_v11   ;;  %258 = vperm.xlu1 %2010, %v20_v10  }
  0x4b   :  { %100 = vperm.xlu0 %2012, %v23_v13   ;;  %266 = vperm.xlu1 %2010, %v22_v12  }
  0x4f   :  { %110 = vperm.xlu0 %2012, %v25_v15   ;;  %274 = vperm.xlu1 %2010, %v24_v14  }
  0x53   :  { %120 = vperm.xlu0 %2012, %v27_v17   ;;  %282 = vperm.xlu1 %2010, %v26_v16  }
  0x57   :  { %130 = vperm.xlu0 %2012, %v29_v19   ;;  %290 = vperm.xlu1 %2010, %v28_v18  }
  0x5b   :  { %140 = vperm.xlu0 %2012, %v31_v21   ;;  %298 = vperm.xlu1 %2010, %v30_v20  }
  0x5f   :  { %150 = vperm.xlu0 %2012, %v33_v23   ;;  %306 = vperm.xlu1 %2010, %v32_v22  }
  0x63   :  { %160 = vperm.xlu0 %2012, %v35_v25   ;;  %314 = vperm.xlu1 %2010, %v34_v24  }
  0x67   :  { %2013 = vset.pattern.permute.xlu1 %v2034_v1 }
  0x81   :  { %v51_v27 = vpop.permute.xlu1 %50  ;;  %v227_v28 = vpop.permute.xlu0 %226 }
  0x82   :  { %v169_v60 = vmul.f32 %v2186_v56, %v51_v27  ;;  %v326_v10 = vmul.f32 %v2192_v58, %v227_v28 }
  0x84   :  { %v198_v3 = vadd.f32 %v2197_v59, %v169_v60 }
  0x85   :  { %v56_v29 = vpop.permute.xlu1 %55  ;;  %v239_v30 = vpop.permute.xlu0 %238 }
  0x86   :  { %v170_v6 = vmul.f32 %v2186_v56, %v56_v29  ;;  %v329_v21 = vmul.f32 %v2192_v58, %v239_v30 }
  0x88   :  { %v199_v17 = vadd.f32 %v2197_v59, %v170_v6 }
  0x89   :  { %v66_v31 = vpop.permute.xlu1 %65  ;;  %v2138_v32 = vpop.permute.xlu0 %246 }
  0x8a   :  { %v172_v14 = vmul.f32 %v2186_v56, %v66_v31  ;;  %v331_v30 = vmul.f32 %v2192_v58, %v2138_v32 }
  0x8c   :  { %v201_v26 = vadd.f32 %v2197_v59, %v172_v14 }
  0x8d   :  { %v76_v33 = vpop.permute.xlu1 %75  ;;  %v2140_v34 = vpop.permute.xlu0 %254 }
  0x8e   :  { %v174_v27 = vmul.f32 %v2186_v56, %v76_v33  ;;  %v333_v32 = vmul.f32 %v2192_v58, %v2140_v34 }
  0x91   :  { %v2142_v35 = vpop.permute.xlu1 %85  ;;  %v2144_v36 = vpop.permute.xlu0 %262 }
  0x92   :  { %v335_v34 = vmul.f32 %v2192_v58, %v2144_v36 }
  0x95   :  { %v2146_v37 = vpop.permute.xlu1 %95  ;;  %v2148_v38 = vpop.permute.xlu0 %270 }
  0x96   :  { %v337_v36 = vmul.f32 %v2192_v58, %v2148_v38 }
  0x99   :  { %v2150_v39 = vpop.permute.xlu1 %105  ;;  %v2152_v40 = vpop.permute.xlu0 %278 }
  0x9a   :  { %v339_v38 = vmul.f32 %v2192_v58, %v2152_v40 }
  0x9d   :  { %v2154_v41 = vpop.permute.xlu1 %115  ;;  %v2156_v42 = vpop.permute.xlu0 %286 }
  0x9e   :  { %v341_v40 = vmul.f32 %v2192_v58, %v2156_v42 }
  0xa1   :  { %v2158_v43 = vpop.permute.xlu1 %125  ;;  %v2160_v44 = vpop.permute.xlu0 %294 }
  0xa2   :  { %v343_v42 = vmul.f32 %v2192_v58, %v2160_v44 }
  0xa5   :  { %v2162_v46 = vpop.permute.xlu1 %135  ;;  %v2164_v47 = vpop.permute.xlu0 %302 }
  0xa6   :  { %v345_v44 = vmul.f32 %v2192_v58, %v2164_v47 }
  0xa9   :  { %v2168_v49 = vpop.permute.xlu1 %145  ;;  %v2170_v50 = vpop.permute.xlu0 %310 }
  0xaa   :  { %v347_v47 = vmul.f32 %v2192_v58, %v2170_v50 }
  0xad   :  { %v2179_v54 = vpop.permute.xlu1 %155  ;;  %v2181_v55 = vpop.permute.xlu0 %318 }
  0xae   :  { %v349_v50 = vmul.f32 %v2192_v58, %v2181_v55 }
  0xb2   :  { %v41_v61 = vpop.permute.xlu0 %40  ;;  %v223_v62 = vpop.permute.xlu1 %222 }
  0xb3   :  { %v167_v63 = vmul.f32 %v2186_v56, %v41_v61  ;;  %v325_v1 = vmul.f32 %v2192_v58, %v223_v62 }
  0xb5   :  { %v196_v2 = vadd.f32 %v2197_v59, %v167_v63 }
  0xb6   :  { %v46_v4 = vpop.permute.xlu0 %45  ;;  %v231_v5 = vpop.permute.xlu1 %230 }
  0xb7   :  { %v350_v7 = vadd.f32 %v325_v1, %v196_v2  ;;  %v168_v8 = vmul.f32 %v2186_v56, %v46_v4  ;;  %v327_v9 = vmul.f32 %v2192_v58, %v231_v5  ;;  %v203_v1 = vadd.f32 %v2197_v59, %v174_v27 }
  0xb8   :  { %v176_v2 = vmul.f32 %v2186_v56, %v2142_v35 }
  0xb9   :  { %v2208_v11 = vmax.f32 %v350_v7, 0.0  ;;  %v197_v12 = vadd.f32 %v2197_v59, %v168_v8  ;;  %v352_v13 = vadd.f32 %v327_v9, %v198_v3 }
  0xba   :  { %v61_v15 = vpop.permute.xlu0 %60  ;;  %v235_v16 = vpop.permute.xlu1 %234 }
  0xbb   :  { %v351_v18 = vadd.f32 %v326_v10, %v197_v12  ;;  %v171_v19 = vmul.f32 %v2186_v56, %v61_v15  ;;  %v328_v20 = vmul.f32 %v2192_v58, %v235_v16  ;;  %402 = vperm.xlu1 %2013, %v2208_v11   ;;  %v2219_v23 = vmax.f32 %v352_v13, 0.0 }
  0xbc   :  { %v205_v12 = vadd.f32 %v2197_v59, %v176_v2  ;;  %v178_v13 = vmul.f32 %v2186_v56, %v2146_v37 }
  0xbd   :  { %v2217_v22 = vmax.f32 %v351_v18, 0.0  ;;  %v200_v24 = vadd.f32 %v2197_v59, %v171_v19  ;;  %v353_v25 = vadd.f32 %v328_v20, %v199_v17 }
  0xbe   :  { %v71_v28 = vpop.permute.xlu0 %70  ;;  %v243_v29 = vpop.permute.xlu1 %242 }
  0xbf   :  { %v354_v31 = vadd.f32 %v329_v21, %v200_v24  ;;  %v173_v45 = vmul.f32 %v2186_v56, %v71_v28  ;;  %v330_v60 = vmul.f32 %v2192_v58, %v243_v29  ;;  %407 = vperm.xlu0 %2012, %v2217_v22   ;;  %412 = vperm.xlu1 %2013, %v2219_v23   ;;  %v2232_v62 = vmax.f32 %v353_v25, 0.0 }
  0xc0   :  { %v207_v24 = vadd.f32 %v2197_v59, %v178_v13  ;;  %v180_v25 = vmul.f32 %v2186_v56, %v2150_v39 }
  0xc1   :  { %v2230_v61 = vmax.f32 %v354_v31, 0.0  ;;  %v202_v33 = vadd.f32 %v2197_v59, %v173_v45  ;;  %v355_v63 = vadd.f32 %v330_v60, %v201_v26 }
  0xc2   :  { %v81_v3 = vpop.permute.xlu0 %80  ;;  %v251_v4 = vpop.permute.xlu1 %250 }
  0xc3   :  { %v356_v5 = vadd.f32 %v331_v30, %v202_v33  ;;  %v175_v6 = vmul.f32 %v2186_v56, %v81_v3  ;;  %v332_v7 = vmul.f32 %v2192_v58, %v251_v4  ;;  %422 = vperm.xlu0 %2012, %v2230_v61   ;;  %417 = vperm.xlu1 %2013, %v2232_v62   ;;  %v2246_v9 = vmax.f32 %v355_v63, 0.0 }
  0xc4   :  { %v209_v33 = vadd.f32 %v2197_v59, %v180_v25  ;;  %v182_v63 = vmul.f32 %v2186_v56, %v2154_v41 }
  0xc5   :  { %v2244_v8 = vmax.f32 %v356_v5, 0.0  ;;  %v204_v35 = vadd.f32 %v2197_v59, %v175_v6  ;;  %v357_v10 = vadd.f32 %v332_v7, %v203_v1 }
  0xc6   :  { %v91_v14 = vpop.permute.xlu0 %90  ;;  %v259_v15 = vpop.permute.xlu1 %258 }
  0xc7   :  { %v358_v16 = vadd.f32 %v333_v32, %v204_v35  ;;  %v177_v17 = vmul.f32 %v2186_v56, %v91_v14  ;;  %v334_v18 = vmul.f32 %v2192_v58, %v259_v15  ;;  %432 = vperm.xlu0 %2012, %v2244_v8   ;;  %427 = vperm.xlu1 %2013, %v2246_v9   ;;  %v2260_v20 = vmax.f32 %v357_v10, 0.0 }
  0xc8   :  { %v211_v35 = vadd.f32 %v2197_v59, %v182_v63  ;;  %v184_v10 = vmul.f32 %v2186_v56, %v2158_v43 }
  0xc9   :  { %v2258_v19 = vmax.f32 %v358_v16, 0.0  ;;  %v206_v37 = vadd.f32 %v2197_v59, %v177_v17  ;;  %v359_v21 = vadd.f32 %v334_v18, %v205_v12 }
  0xca   :  { %v101_v26 = vpop.permute.xlu0 %100  ;;  %v267_v27 = vpop.permute.xlu1 %266 }
  0xcb   :  { %v360_v28 = vadd.f32 %v335_v34, %v206_v37  ;;  %v179_v29 = vmul.f32 %v2186_v56, %v101_v26  ;;  %v336_v31 = vmul.f32 %v2192_v58, %v267_v27  ;;  %442 = vperm.xlu0 %2012, %v2258_v19   ;;  %437 = vperm.xlu1 %2013, %v2260_v20   ;;  %v2274_v60 = vmax.f32 %v359_v21, 0.0 }
  0xcc   :  { %v213_v37 = vadd.f32 %v2197_v59, %v184_v10  ;;  %v186_v21 = vmul.f32 %v2186_v56, %v2162_v46 }
  0xcd   :  { %v2272_v45 = vmax.f32 %v360_v28, 0.0  ;;  %v208_v39 = vadd.f32 %v2197_v59, %v179_v29  ;;  %v361_v30 = vadd.f32 %v336_v31, %v207_v24 }
  0xce   :  { %v111_v1 = vpop.permute.xlu0 %110  ;;  %v275_v2 = vpop.permute.xlu1 %274 }
  0xcf   :  { %v362_v3 = vadd.f32 %v337_v36, %v208_v39  ;;  %v181_v4 = vmul.f32 %v2186_v56, %v111_v1  ;;  %v338_v5 = vmul.f32 %v2192_v58, %v275_v2  ;;  %452 = vperm.xlu0 %2012, %v2272_v45   ;;  %447 = vperm.xlu1 %2013, %v2274_v60   ;;  %v2288_v7 = vmax.f32 %v361_v30, 0.0 }
  0xd0   :  { %v215_v39 = vadd.f32 %v2197_v59, %v186_v21  ;;  %v188_v30 = vmul.f32 %v2186_v56, %v2168_v49 }
  0xd1   :  { %v2286_v6 = vmax.f32 %v362_v3, 0.0  ;;  %v210_v41 = vadd.f32 %v2197_v59, %v181_v4  ;;  %v363_v32 = vadd.f32 %v338_v5, %v209_v33 }
  0xd2   :  { %v121_v12 = vpop.permute.xlu0 %120  ;;  %v283_v13 = vpop.permute.xlu1 %282 }
  0xd3   :  { %v364_v14 = vadd.f32 %v339_v38, %v210_v41  ;;  %v183_v15 = vmul.f32 %v2186_v56, %v121_v12  ;;  %v340_v16 = vmul.f32 %v2192_v58, %v283_v13  ;;  %462 = vperm.xlu0 %2012, %v2286_v6   ;;  %457 = vperm.xlu1 %2013, %v2288_v7   ;;  %v2302_v18 = vmax.f32 %v363_v32, 0.0 }
  0xd4   :  { %v217_v41 = vadd.f32 %v2197_v59, %v188_v30  ;;  %v190_v32 = vmul.f32 %v2186_v56, %v2179_v54 }
  0xd5   :  { %v2300_v17 = vmax.f32 %v364_v14, 0.0  ;;  %v212_v43 = vadd.f32 %v2197_v59, %v183_v15  ;;  %v365_v34 = vadd.f32 %v340_v16, %v211_v35 }
  0xd6   :  { %v131_v24 = vpop.permute.xlu0 %130  ;;  %v291_v25 = vpop.permute.xlu1 %290 }
  0xd7   :  { %v366_v26 = vadd.f32 %v341_v40, %v212_v43  ;;  %v185_v27 = vmul.f32 %v2186_v56, %v131_v24  ;;  %v342_v28 = vmul.f32 %v2192_v58, %v291_v25  ;;  %472 = vperm.xlu0 %2012, %v2300_v17   ;;  %467 = vperm.xlu1 %2013, %v2302_v18   ;;  %v2316_v31 = vmax.f32 %v365_v34, 0.0 }
  0xd8   :  { %v219_v43 = vadd.f32 %v2197_v59, %v190_v32 }
  0xd9   :  { %v2314_v29 = vmax.f32 %v366_v26, 0.0  ;;  %v214_v46 = vadd.f32 %v2197_v59, %v185_v27  ;;  %v367_v36 = vadd.f32 %v342_v28, %v213_v37 }
  0xda   :  { %v141_v33 = vpop.permute.xlu0 %140  ;;  %v299_v63 = vpop.permute.xlu1 %298 }
  0xdb   :  { %v368_v1 = vadd.f32 %v343_v42, %v214_v46  ;;  %v187_v2 = vmul.f32 %v2186_v56, %v141_v33  ;;  %v344_v3 = vmul.f32 %v2192_v58, %v299_v63  ;;  %482 = vperm.xlu0 %2012, %v2314_v29   ;;  %477 = vperm.xlu1 %2013, %v2316_v31   ;;  %v2330_v5 = vmax.f32 %v367_v36, 0.0 }
  0xdd   :  { %v2328_v4 = vmax.f32 %v368_v1, 0.0  ;;  %v216_v49 = vadd.f32 %v2197_v59, %v187_v2  ;;  %v369_v38 = vadd.f32 %v344_v3, %v215_v39 }
  0xde   :  { %v151_v35 = vpop.permute.xlu0 %150  ;;  %v307_v10 = vpop.permute.xlu1 %306 }
  0xdf   :  { %v370_v12 = vadd.f32 %v345_v44, %v216_v49  ;;  %v189_v13 = vmul.f32 %v2186_v56, %v151_v35  ;;  %v346_v14 = vmul.f32 %v2192_v58, %v307_v10  ;;  %492 = vperm.xlu0 %2012, %v2328_v4   ;;  %487 = vperm.xlu1 %2013, %v2330_v5   ;;  %v2344_v16 = vmax.f32 %v369_v38, 0.0 }
  0xe0   :  { %v2036_v49 = vmov 3  }
  0xe1   :  { %v2342_v15 = vmax.f32 %v370_v12, 0.0  ;;  %v218_v54 = vadd.f32 %v2197_v59, %v189_v13  ;;  %v371_v40 = vadd.f32 %v346_v14, %v217_v41 }
  0xe2   :  { %v161_v34 = vpop.permute.xlu0 %160  ;;  %v315_v37 = vpop.permute.xlu1 %314 }
  0xe3   :  { %v372_v21 = vadd.f32 %v347_v47, %v218_v54  ;;  %v191_v24 = vmul.f32 %v2186_v56, %v161_v34  ;;  %v348_v25 = vmul.f32 %v2192_v58, %v315_v37  ;;  %502 = vperm.xlu0 %2012, %v2342_v15   ;;  %497 = vperm.xlu1 %2013, %v2344_v16   ;;  %v2356_v27 = vmax.f32 %v371_v40, 0.0 }
  0xe5   :  { %v2354_v26 = vmax.f32 %v372_v21, 0.0  ;;  %v220_v28 = vadd.f32 %v2197_v59, %v191_v24  ;;  %v373_v42 = vadd.f32 %v348_v25, %v219_v43 }
  0xe7   :  { %v374_v46 = vadd.f32 %v349_v50, %v220_v28  ;;  %512 = vperm.xlu0 %2012, %v2354_v26   ;;  %507 = vperm.xlu1 %2013, %v2356_v27   ;;  %v2363_v36 = vmax.f32 %v373_v42, 0.0 }
  0xe9   :  { %v2361_v56 = vmax.f32 %v374_v46, 0.0 }
  0xeb   :  { %522 = vperm.xlu0 %2012, %v2361_v56   ;;  %517 = vperm.xlu1 %2013, %v2363_v36  }
  0xef   :  { %2015 = vset.pattern.permute.xlu0 %v2033_v0  ;;  %2014 = vset.pattern.permute.xlu1 %v2033_v0  ;;  %v2035_v0 = vmov 2  }
  0xf0   :  { %559 = vperm.xlu0 %2015, %v2217_v22   ;;  %555 = vperm.xlu1 %2014, %v2208_v11  }
  0xf4   :  { %571 = vperm.xlu0 %2015, %v2230_v61   ;;  %563 = vperm.xlu1 %2014, %v2219_v23  }
  0xf8   :  { %579 = vperm.xlu0 %2015, %v2244_v8   ;;  %567 = vperm.xlu1 %2014, %v2232_v62  }
  0xfc   :  { %587 = vperm.xlu0 %2015, %v2258_v19   ;;  %575 = vperm.xlu1 %2014, %v2246_v9  }
 0x100   :  { %595 = vperm.xlu0 %2015, %v2272_v45   ;;  %583 = vperm.xlu1 %2014, %v2260_v20  }
 0x104   :  { %603 = vperm.xlu0 %2015, %v2286_v6   ;;  %591 = vperm.xlu1 %2014, %v2274_v60  }
 0x108   :  { %611 = vperm.xlu0 %2015, %v2300_v17   ;;  %599 = vperm.xlu1 %2014, %v2288_v7  }
 0x10c   :  { %619 = vperm.xlu0 %2015, %v2314_v29   ;;  %607 = vperm.xlu1 %2014, %v2302_v18  }
 0x110   :  { %627 = vperm.xlu0 %2015, %v2328_v4   ;;  %615 = vperm.xlu1 %2014, %v2316_v31  }
 0x114   :  { %635 = vperm.xlu0 %2015, %v2342_v15   ;;  %623 = vperm.xlu1 %2014, %v2330_v5  }
 0x118   :  { %643 = vperm.xlu0 %2015, %v2354_v26   ;;  %631 = vperm.xlu1 %2014, %v2344_v16  }
 0x11c   :  { %651 = vperm.xlu0 %2015, %v2361_v56   ;;  %639 = vperm.xlu1 %2014, %v2356_v27  }
 0x120   :  { %2017 = vset.pattern.permute.xlu0 %v2035_v0  ;;  %647 = vperm.xlu1 %2014, %v2363_v36  }
 0x121   :  { %688 = vperm.xlu0 %2017, %v2217_v22  }
 0x124   :  { %2016 = vset.pattern.permute.xlu1 %v2035_v0 }
 0x125   :  { %700 = vperm.xlu0 %2017, %v2230_v61   ;;  %684 = vperm.xlu1 %2016, %v2208_v11  }
 0x129   :  { %708 = vperm.xlu0 %2017, %v2244_v8   ;;  %692 = vperm.xlu1 %2016, %v2219_v23  }
 0x12d   :  { %716 = vperm.xlu0 %2017, %v2258_v19   ;;  %696 = vperm.xlu1 %2016, %v2232_v62  }
 0x131   :  { %724 = vperm.xlu0 %2017, %v2272_v45   ;;  %704 = vperm.xlu1 %2016, %v2246_v9  }
 0x135   :  { %732 = vperm.xlu0 %2017, %v2286_v6   ;;  %712 = vperm.xlu1 %2016, %v2260_v20  }
 0x139   :  { %740 = vperm.xlu0 %2017, %v2300_v17   ;;  %720 = vperm.xlu1 %2016, %v2274_v60  }
 0x13a   :  { %v2407_v55 = vpop.permute.xlu1 %402 }
 0x13d   :  { %748 = vperm.xlu0 %2017, %v2314_v29   ;;  %728 = vperm.xlu1 %2016, %v2288_v7  }
 0x13e   :  { %v2411_v58 = vpop.permute.xlu0 %407  ;;  %v2413_v59 = vpop.permute.xlu1 %412 }
 0x141   :  { %756 = vperm.xlu0 %2017, %v2328_v4   ;;  %736 = vperm.xlu1 %2016, %v2302_v18  }
 0x142   :  { %v2417_v39 = vpop.permute.xlu0 %422  ;;  %v2419_v30 = vpop.permute.xlu1 %417 }
 0x145   :  { %764 = vperm.xlu0 %2017, %v2342_v15   ;;  %744 = vperm.xlu1 %2016, %v2316_v31  }
 0x146   :  { %v2423_v33 = vpop.permute.xlu0 %432  ;;  %v2425_v63 = vpop.permute.xlu1 %427 }
 0x147   :  { %3846 = vst [vmem:[#allocation2_spill] sm:$0xff] %v2425_v63 }
 0x149   :  { %772 = vperm.xlu0 %2017, %v2354_v26   ;;  %752 = vperm.xlu1 %2016, %v2330_v5  }
 0x14a   :  { %v2429_v1 = vpop.permute.xlu0 %442  ;;  %v2431_v2 = vpop.permute.xlu1 %437 }
 0x14b   :  { %3847 = vst [vmem:[#allocation3_spill] sm:$0xff] %v2429_v1  ;;  %3848 = vst [vmem:[#allocation4_spill] sm:$0xff] %v2431_v2 }
 0x14d   :  { %780 = vperm.xlu0 %2017, %v2361_v56   ;;  %760 = vperm.xlu1 %2016, %v2344_v16  }
 0x14e   :  { %v2435_v3 = vpop.permute.xlu0 %452  ;;  %v2437_v44 = vpop.permute.xlu1 %447 }
 0x14f   :  { %3849 = vst [vmem:[#allocation5_spill] sm:$0xff] %v2435_v3  ;;  %3850 = vst [vmem:[#allocation6_spill] sm:$0xff] %v2437_v44 }
 0x151   :  { %2019 = vset.pattern.permute.xlu0 %v2036_v49  ;;  %768 = vperm.xlu1 %2016, %v2356_v27  }
 0x152   :  { %817 = vperm.xlu0 %2019, %v2217_v22   ;;  %v2441_v38 = vpop.permute.xlu0 %462  ;;  %v2443_v41 = vpop.permute.xlu1 %457 }
 0x153   :  { %3851 = vst [vmem:[#allocation7_spill] sm:$0xff] %v2441_v38  ;;  %3852 = vst [vmem:[#allocation8_spill] sm:$0xff] %v2443_v41 }
 0x155   :  { %776 = vperm.xlu1 %2016, %v2363_v36  }
 0x156   :  { %829 = vperm.xlu0 %2019, %v2230_v61   ;;  %v2447_v32 = vpop.permute.xlu0 %472  ;;  %v2449_v35 = vpop.permute.xlu1 %467 }
 0x157   :  { %3853 = vst [vmem:[#allocation9_spill] sm:$0xff] %v2447_v32  ;;  %3854 = vst [vmem:[#allocation10_spill] sm:$0xff] %v2449_v35 }
 0x159   :  { %2018 = vset.pattern.permute.xlu1 %v2036_v49 }
 0x15a   :  { %837 = vperm.xlu0 %2019, %v2244_v8   ;;  %v2452_v10 = vpop.permute.xlu0 %482  ;;  %813 = vperm.xlu1 %2018, %v2208_v11   ;;  %v478_v12 = vpop.permute.xlu1 %477 }
 0x15b   :  { %3855 = vst [vmem:[#allocation11_spill] sm:$0xff] %v2452_v10 }
 0x15e   :  { %845 = vperm.xlu0 %2019, %v2258_v19   ;;  %v2456_v13 = vpop.permute.xlu0 %492  ;;  %821 = vperm.xlu1 %2018, %v2219_v23   ;;  %v2459_v14 = vpop.permute.xlu1 %487 }
 0x15f   :  { %3856 = vst [vmem:[#allocation12_spill] sm:$0xff] %v2456_v13 }
 0x162   :  { %853 = vperm.xlu0 %2019, %v2272_v45   ;;  %v2462_v47 = vpop.permute.xlu0 %502  ;;  %825 = vperm.xlu1 %2018, %v2232_v62   ;;  %v2465_v54 = vpop.permute.xlu1 %497 }
 0x163   :  { %3857 = vst [vmem:[#allocation13_spill] sm:$0xff] %v2462_v47  ;;  %v2039_v47 = vmov 6  }
 0x166   :  { %861 = vperm.xlu0 %2019, %v2286_v6   ;;  %v2468_v40 = vpop.permute.xlu0 %512  ;;  %833 = vperm.xlu1 %2018, %v2246_v9   ;;  %v2471_v43 = vpop.permute.xlu1 %507 }
 0x167   :  { %3858 = vst [vmem:[#allocation14_spill] sm:$0xff] %v2468_v40 }
 0x16a   :  { %869 = vperm.xlu0 %2019, %v2300_v17   ;;  %v2474_v34 = vpop.permute.xlu0 %522  ;;  %841 = vperm.xlu1 %2018, %v2260_v20   ;;  %v2477_v37 = vpop.permute.xlu1 %517 }
 0x16b   :  { %3859 = vst [vmem:[#allocation15_spill] sm:$0xff] %v2474_v34 }
 0x16e   :  { %877 = vperm.xlu0 %2019, %v2314_v29   ;;  %849 = vperm.xlu1 %2018, %v2274_v60  }
 0x16f   :  { %v2481_v21 = vpop.permute.xlu0 %559  ;;  %v2483_v24 = vpop.permute.xlu1 %555 }
 0x170   :  { %3860 = vst [vmem:[#allocation16_spill] sm:$0xff] %v2481_v21  ;;  %3861 = vst [vmem:[#allocation17_spill] sm:$0xff] %v2483_v24 }
 0x172   :  { %885 = vperm.xlu0 %2019, %v2328_v4   ;;  %857 = vperm.xlu1 %2018, %v2288_v7  }
 0x173   :  { %v2487_v25 = vpop.permute.xlu0 %571  ;;  %v2489_v50 = vpop.permute.xlu1 %563 }
 0x174   :  { %3862 = vst [vmem:[#allocation18_spill] sm:$0xff] %v2487_v25  ;;  %3863 = vst [vmem:[#allocation19_spill] sm:$0xff] %v2489_v50 }
 0x176   :  { %893 = vperm.xlu0 %2019, %v2342_v15   ;;  %865 = vperm.xlu1 %2018, %v2302_v18  }
 0x177   :  { %v2493_v28 = vpop.permute.xlu0 %579  ;;  %v2495_v42 = vpop.permute.xlu1 %567 }
 0x178   :  { %3864 = vst [vmem:[#allocation20_spill] sm:$0xff] %v2493_v28  ;;  %3865 = vst [vmem:[#allocation21_spill] sm:$0xff] %v2495_v42 }
 0x17a   :  { %901 = vperm.xlu0 %2019, %v2354_v26   ;;  %873 = vperm.xlu1 %2018, %v2316_v31  }
 0x17b   :  { %v2499_v46 = vpop.permute.xlu0 %587  ;;  %v2501_v0 = vpop.permute.xlu1 %575 }
 0x17c   :  { %3866 = vst [vmem:[#allocation22_spill] sm:$0xff] %v2499_v46  ;;  %3867 = vst [vmem:[#allocation23_spill] sm:$0xff] %v2501_v0 }
 0x17e   :  { %909 = vperm.xlu0 %2019, %v2361_v56   ;;  %881 = vperm.xlu1 %2018, %v2330_v5  }
 0x17f   :  { %v2505_v49 = vpop.permute.xlu0 %595  ;;  %v2507_v57 = vpop.permute.xlu1 %583 }
 0x180   :  { %3868 = vst [vmem:[#allocation24_spill] sm:$0xff] %v2505_v49  ;;  %3869 = vst [vmem:[#allocation25_spill] sm:$0xff] %v2507_v57  ;;  %v3830_v57 = vsub.s32 3, %v2166_v48  ;;  %v3831_v49 = vsub.s32 4, %v2166_v48 }
 0x182   :  { %2021 = vset.pattern.permute.xlu0 %v2037_v53  ;;  %889 = vperm.xlu1 %2018, %v2344_v16  }
 0x183   :  { %946 = vperm.xlu0 %2021, %v2217_v22   ;;  %v2511_v51 = vpop.permute.xlu0 %603  ;;  %v2513_v35 = vpop.permute.xlu1 %591 }
 0x184   :  { %3870 = vst [vmem:[#allocation26_spill] sm:$0xff] %v2511_v51  ;;  %3871 = vst [vmem:[#allocation27_spill] sm:$0xff] %v2513_v35  ;;  %v2532_v35 = vrot.slane %v2176_v52, %v3830_v57 }
 0x186   :  { %897 = vperm.xlu1 %2018, %v2356_v27   ;;  %3876 = vst [vmem:[#allocation32_spill] sm:$0xff] %v2532_v35 }
 0x187   :  { %958 = vperm.xlu0 %2021, %v2230_v61   ;;  %v2517_v0 = vpop.permute.xlu0 %611  ;;  %v2519_v46 = vpop.permute.xlu1 %599 }
 0x188   :  { %3872 = vst [vmem:[#allocation28_spill] sm:$0xff] %v2517_v0  ;;  %3873 = vst [vmem:[#allocation29_spill] sm:$0xff] %v2519_v46  ;;  %v2537_v46 = vrot.slane %v2176_v52, %v3831_v49  ;;  %v546_v49 = vmul.f32 %v2532_v35, %v2459_v14 }
 0x18a   :  { %905 = vperm.xlu1 %2018, %v2363_v36   ;;  %3877 = vst [vmem:[#allocation33_spill] sm:$0xff] %v2537_v46 }
 0x18b   :  { %966 = vperm.xlu0 %2021, %v2244_v8   ;;  %v2525_v42 = vpop.permute.xlu0 %619  ;;  %v2527_v51 = vpop.permute.xlu1 %607 }
 0x18c   :  { %3874 = vst [vmem:[#allocation30_spill] sm:$0xff] %v2525_v42  ;;  %3875 = vst [vmem:[#allocation31_spill] sm:$0xff] %v2527_v51  ;;  %v544_v51 = vmul.f32 %v2532_v35, %v478_v12 }
 0x18e   :  { %2020 = vset.pattern.permute.xlu1 %v2037_v53 }
 0x18f   :  { %974 = vperm.xlu0 %2021, %v2258_v19   ;;  %v2540_v0 = vpop.permute.xlu0 %627  ;;  %942 = vperm.xlu1 %2020, %v2208_v11   ;;  %v616_v42 = vpop.permute.xlu1 %615 }
 0x190   :  { %3878 = vst [vmem:[#allocation34_spill] sm:$0xff] %v2540_v0  ;;  %v673_v28 = vmul.f32 %v2537_v46, %v616_v42 }
 0x192   :  { %v2545_v50 = vadd.f32 %v673_v28, %v544_v51  ;;  %v548_v28 = vmul.f32 %v2532_v35, %v2465_v54 }
 0x193   :  { %982 = vperm.xlu0 %2021, %v2272_v45   ;;  %v2548_v57 = vpop.permute.xlu0 %635  ;;  %950 = vperm.xlu1 %2020, %v2219_v23   ;;  %v624_v53 = vpop.permute.xlu1 %623 }
 0x194   :  { %3879 = vst [vmem:[#allocation35_spill] sm:$0xff] %v2548_v57  ;;  %v675_v0 = vmul.f32 %v2537_v46, %v624_v53 }
 0x196   :  { %v2554_v25 = vadd.f32 %v675_v0, %v546_v49  ;;  %v550_v49 = vmul.f32 %v2532_v35, %v2471_v43 }
 0x197   :  { %990 = vperm.xlu0 %2021, %v2286_v6   ;;  %v2557_v12 = vpop.permute.xlu0 %643  ;;  %954 = vperm.xlu1 %2020, %v2232_v62   ;;  %v632_v51 = vpop.permute.xlu1 %631 }
 0x198   :  { %3880 = vst [vmem:[#allocation36_spill] sm:$0xff] %v2557_v12  ;;  %v677_v42 = vmul.f32 %v2537_v46, %v632_v51  ;;  %v552_v51 = vmul.f32 %v2532_v35, %v2477_v37 }
 0x19a   :  { %v2563_v57 = vadd.f32 %v677_v42, %v548_v28 }
 0x19b   :  { %998 = vperm.xlu0 %2021, %v2300_v17   ;;  %v2566_v14 = vpop.permute.xlu0 %651  ;;  %962 = vperm.xlu1 %2020, %v2246_v9   ;;  %v640_v0 = vpop.permute.xlu1 %639 }
 0x19c   :  { %3881 = vst [vmem:[#allocation37_spill] sm:$0xff] %v2566_v14  ;;  %v679_v53 = vmul.f32 %v2537_v46, %v640_v0 }
 0x19e   :  { %v2572_v12 = vadd.f32 %v679_v53, %v550_v49 }
 0x19f   :  { %1006 = vperm.xlu0 %2021, %v2314_v29   ;;  %970 = vperm.xlu1 %2020, %v2260_v20   ;;  %v648_v54 = vpop.permute.xlu1 %647 }
 0x1a0   :  { %v681_v28 = vmul.f32 %v2537_v46, %v648_v54  ;;  %v2579_v42 = vpop.permute.xlu0 %688 }
 0x1a1   :  { %3882 = vst [vmem:[#allocation38_spill] sm:$0xff] %v2579_v42 }
 0x1a2   :  { %v2581_v14 = vadd.f32 %v681_v28, %v552_v51 }
 0x1a3   :  { %1014 = vperm.xlu0 %2021, %v2328_v4   ;;  %978 = vperm.xlu1 %2020, %v2274_v60  }
 0x1a4   :  { %v2585_v43 = vpop.permute.xlu0 %700  ;;  %v2587_v0 = vpop.permute.xlu1 %684 }
 0x1a5   :  { %3883 = vst [vmem:[#allocation39_spill] sm:$0xff] %v2585_v43  ;;  %3884 = vst [vmem:[#allocation40_spill] sm:$0xff] %v2587_v0  ;;  %v2038_v0 = vmov 5  }
 0x1a7   :  { %1022 = vperm.xlu0 %2021, %v2342_v15   ;;  %986 = vperm.xlu1 %2020, %v2288_v7  }
 0x1a8   :  { %v2591_v49 = vpop.permute.xlu0 %708  ;;  %v2593_v37 = vpop.permute.xlu1 %692 }
 0x1a9   :  { %3885 = vst [vmem:[#allocation41_spill] sm:$0xff] %v2591_v49  ;;  %3886 = vst [vmem:[#allocation42_spill] sm:$0xff] %v2593_v37 }
 0x1ab   :  { %1030 = vperm.xlu0 %2021, %v2354_v26   ;;  %994 = vperm.xlu1 %2020, %v2302_v18  }
 0x1ac   :  { %v2597_v53 = vpop.permute.xlu0 %716  ;;  %v2599_v54 = vpop.permute.xlu1 %696 }
 0x1ad   :  { %3887 = vst [vmem:[#allocation43_spill] sm:$0xff] %v2597_v53  ;;  %3888 = vst [vmem:[#allocation44_spill] sm:$0xff] %v2599_v54 }
 0x1af   :  { %1038 = vperm.xlu0 %2021, %v2361_v56   ;;  %1002 = vperm.xlu1 %2020, %v2316_v31  }
 0x1b0   :  { %v2603_v51 = vpop.permute.xlu0 %724  ;;  %v2605_v28 = vpop.permute.xlu1 %704 }
 0x1b1   :  { %3889 = vst [vmem:[#allocation45_spill] sm:$0xff] %v2603_v51  ;;  %3890 = vst [vmem:[#allocation46_spill] sm:$0xff] %v2605_v28 }
 0x1b3   :  { %2023 = vset.pattern.permute.xlu0 %v2038_v0  ;;  %1010 = vperm.xlu1 %2020, %v2330_v5  }
 0x1b4   :  { %1075 = vperm.xlu0 %2023, %v2217_v22   ;;  %v2609_v37 = vpop.permute.xlu0 %732  ;;  %v2611_v49 = vpop.permute.xlu1 %712 }
 0x1b5   :  { %3891 = vst [vmem:[#allocation47_spill] sm:$0xff] %v2609_v37  ;;  %3892 = vst [vmem:[#allocation48_spill] sm:$0xff] %v2611_v49 }
 0x1b7   :  { %1018 = vperm.xlu1 %2020, %v2344_v16  }
 0x1b8   :  { %1087 = vperm.xlu0 %2023, %v2230_v61   ;;  %v2615_v54 = vpop.permute.xlu0 %740  ;;  %v2617_v53 = vpop.permute.xlu1 %720 }
 0x1b9   :  { %3893 = vst [vmem:[#allocation49_spill] sm:$0xff] %v2615_v54  ;;  %3894 = vst [vmem:[#allocation50_spill] sm:$0xff] %v2617_v53 }
 0x1bb   :  { %1026 = vperm.xlu1 %2020, %v2356_v27  }
 0x1bc   :  { %1095 = vperm.xlu0 %2023, %v2244_v8   ;;  %v2621_v28 = vpop.permute.xlu0 %748  ;;  %v2623_v51 = vpop.permute.xlu1 %728 }
 0x1bd   :  { %3895 = vst [vmem:[#allocation51_spill] sm:$0xff] %v2621_v28  ;;  %3896 = vst [vmem:[#allocation52_spill] sm:$0xff] %v2623_v51 }
 0x1bf   :  { %1034 = vperm.xlu1 %2020, %v2363_v36  }
 0x1c0   :  { %1103 = vperm.xlu0 %2023, %v2258_v19   ;;  %v2627_v49 = vpop.permute.xlu0 %756  ;;  %v2629_v37 = vpop.permute.xlu1 %736 }
 0x1c1   :  { %3897 = vst [vmem:[#allocation53_spill] sm:$0xff] %v2627_v49  ;;  %3898 = vst [vmem:[#allocation54_spill] sm:$0xff] %v2629_v37 }
 0x1c3   :  { %2022 = vset.pattern.permute.xlu1 %v2038_v0 }
 0x1c4   :  { %1111 = vperm.xlu0 %2023, %v2272_v45   ;;  %v2632_v53 = vpop.permute.xlu0 %764  ;;  %1071 = vperm.xlu1 %2022, %v2208_v11   ;;  %v745_v54 = vpop.permute.xlu1 %744 }
 0x1c5   :  { %3899 = vst [vmem:[#allocation55_spill] sm:$0xff] %v2632_v53 }
 0x1c8   :  { %1119 = vperm.xlu0 %2023, %v2286_v6   ;;  %v2636_v28 = vpop.permute.xlu0 %772  ;;  %1079 = vperm.xlu1 %2022, %v2219_v23   ;;  %v2639_v51 = vpop.permute.xlu1 %752 }
 0x1c9   :  { %3900 = vst [vmem:[#allocation56_spill] sm:$0xff] %v2636_v28 }
 0x1cc   :  { %1127 = vperm.xlu0 %2023, %v2300_v17   ;;  %v2642_v49 = vpop.permute.xlu0 %780  ;;  %1083 = vperm.xlu1 %2022, %v2232_v62   ;;  %v2645_v0 = vpop.permute.xlu1 %760 }
 0x1cd   :  { %3901 = vst [vmem:[#allocation57_spill] sm:$0xff] %v2642_v49 }
 0x1d0   :  { %1135 = vperm.xlu0 %2023, %v2314_v29   ;;  %1091 = vperm.xlu1 %2022, %v2246_v9   ;;  %v2649_v37 = vpop.permute.xlu1 %768 }
 0x1d1   :  { %v2651_v53 = vpop.permute.xlu0 %817 }
 0x1d2   :  { %3902 = vst [vmem:[#allocation58_spill] sm:$0xff] %v2651_v53 }
 0x1d4   :  { %1143 = vperm.xlu0 %2023, %v2328_v4   ;;  %1099 = vperm.xlu1 %2022, %v2260_v20   ;;  %v2655_v28 = vpop.permute.xlu1 %776 }
 0x1d5   :  { %v2657_v43 = vpop.permute.xlu0 %829 }
 0x1d6   :  { %3903 = vst [vmem:[#allocation59_spill] sm:$0xff] %v2657_v43 }
 0x1d8   :  { %1151 = vperm.xlu0 %2023, %v2342_v15   ;;  %1107 = vperm.xlu1 %2022, %v2274_v60  }
 0x1d9   :  { %v2661_v49 = vpop.permute.xlu0 %837  ;;  %v2663_v42 = vpop.permute.xlu1 %813 }
 0x1da   :  { %3904 = vst [vmem:[#allocation60_spill] sm:$0xff] %v2661_v49  ;;  %3905 = vst [vmem:[#allocation61_spill] sm:$0xff] %v2663_v42 }
 0x1dc   :  { %1159 = vperm.xlu0 %2023, %v2354_v26   ;;  %1115 = vperm.xlu1 %2022, %v2288_v7  }
 0x1dd   :  { %v2667_v53 = vpop.permute.xlu0 %845  ;;  %v2669_v34 = vpop.permute.xlu1 %821 }
 0x1de   :  { %3906 = vst [vmem:[#allocation62_spill] sm:$0xff] %v2667_v53  ;;  %3907 = vst [vmem:[#allocation63_spill] sm:$0xff] %v2669_v34 }
 0x1e0   :  { %1167 = vperm.xlu0 %2023, %v2361_v56   ;;  %1123 = vperm.xlu1 %2022, %v2302_v18  }
 0x1e1   :  { %v2673_v43 = vpop.permute.xlu0 %853  ;;  %v2675_v40 = vpop.permute.xlu1 %825 }
 0x1e2   :  { %3908 = vst [vmem:[#allocation64_spill] sm:$0xff] %v2673_v43  ;;  %3909 = vst [vmem:[#allocation65_spill] sm:$0xff] %v2675_v40 }
 0x1e4   :  { %2025 = vset.pattern.permute.xlu0 %v2039_v47  ;;  %1131 = vperm.xlu1 %2022, %v2316_v31  }
 0x1e5   :  { %1204 = vperm.xlu0 %2025, %v2217_v22   ;;  %v2679_v42 = vpop.permute.xlu0 %861  ;;  %v2681_v49 = vpop.permute.xlu1 %833 }
 0x1e6   :  { %3910 = vst [vmem:[#allocation66_spill] sm:$0xff] %v2679_v42  ;;  %3911 = vst [vmem:[#allocation67_spill] sm:$0xff] %v2681_v49 }
 0x1e8   :  { %1139 = vperm.xlu1 %2022, %v2330_v5  }
 0x1e9   :  { %1216 = vperm.xlu0 %2025, %v2230_v61   ;;  %v2685_v34 = vpop.permute.xlu0 %869  ;;  %v2687_v53 = vpop.permute.xlu1 %841 }
 0x1ea   :  { %3912 = vst [vmem:[#allocation68_spill] sm:$0xff] %v2685_v34  ;;  %3913 = vst [vmem:[#allocation69_spill] sm:$0xff] %v2687_v53  ;;  %v3832_v34 = vsub.s32 5, %v2166_v48  ;;  %v914_v53 = vsub.s32 6, %v2166_v48 }
 0x1ec   :  { %1147 = vperm.xlu1 %2022, %v2344_v16  }
 0x1ed   :  { %1224 = vperm.xlu0 %2025, %v2244_v8   ;;  %v2691_v40 = vpop.permute.xlu0 %877  ;;  %v2693_v43 = vpop.permute.xlu1 %849 }
 0x1ee   :  { %3914 = vst [vmem:[#allocation70_spill] sm:$0xff] %v2691_v40  ;;  %3915 = vst [vmem:[#allocation71_spill] sm:$0xff] %v2693_v43  ;;  %v2712_v43 = vrot.slane %v2176_v52, %v3832_v34 }
 0x1f0   :  { %1155 = vperm.xlu1 %2022, %v2356_v27   ;;  %3920 = vst [vmem:[#allocation76_spill] sm:$0xff] %v2712_v43 }
 0x1f1   :  { %1232 = vperm.xlu0 %2025, %v2258_v19   ;;  %v2697_v49 = vpop.permute.xlu0 %885  ;;  %v2699_v42 = vpop.permute.xlu1 %857 }
 0x1f2   :  { %3916 = vst [vmem:[#allocation72_spill] sm:$0xff] %v2697_v49  ;;  %3917 = vst [vmem:[#allocation73_spill] sm:$0xff] %v2699_v42  ;;  %v2715_v49 = vrot.slane %v2176_v52, %v914_v53 }
 0x1f4   :  { %1163 = vperm.xlu1 %2022, %v2363_v36   ;;  %3921 = vst [vmem:[#allocation77_spill] sm:$0xff] %v2715_v49 }
 0x1f5   :  { %1240 = vperm.xlu0 %2025, %v2272_v45   ;;  %v2705_v13 = vpop.permute.xlu0 %893  ;;  %v2707_v40 = vpop.permute.xlu1 %865 }
 0x1f6   :  { %3918 = vst [vmem:[#allocation74_spill] sm:$0xff] %v2705_v13  ;;  %3919 = vst [vmem:[#allocation75_spill] sm:$0xff] %v2707_v40  ;;  %v802_v13 = vmul.f32 %v2712_v43, %v745_v54 }
 0x1f8   :  { %2024 = vset.pattern.permute.xlu1 %v2039_v47  ;;  %v804_v47 = vmul.f32 %v2712_v43, %v2639_v51 }
 0x1f9   :  { %1248 = vperm.xlu0 %2025, %v2286_v6   ;;  %v2718_v42 = vpop.permute.xlu0 %901  ;;  %1200 = vperm.xlu1 %2024, %v2208_v11   ;;  %v874_v10 = vpop.permute.xlu1 %873 }
 0x1fa   :  { %3922 = vst [vmem:[#allocation78_spill] sm:$0xff] %v2718_v42  ;;  %v931_v40 = vmul.f32 %v2715_v49, %v874_v10 }
 0x1fc   :  { %v1755_v32 = vadd.f32 %v931_v40, %v802_v13  ;;  %v806_v13 = vmul.f32 %v2712_v43, %v2645_v0 }
 0x1fd   :  { %1256 = vperm.xlu0 %2025, %v2300_v17   ;;  %v2724_v34 = vpop.permute.xlu0 %909  ;;  %1208 = vperm.xlu1 %2024, %v2219_v23   ;;  %v882_v52 = vpop.permute.xlu1 %881 }
 0x1fe   :  { %3923 = vst [vmem:[#allocation79_spill] sm:$0xff] %v2724_v34  ;;  %v2730_v53 = vadd.f32 %v1755_v32, %v2545_v50  ;;  %v933_v42 = vmul.f32 %v2715_v49, %v882_v52 }
 0x200   :  { %v1757_v41 = vadd.f32 %v933_v42, %v804_v47  ;;  %v808_v42 = vmul.f32 %v2712_v43, %v2649_v37 }
 0x201   :  { %1264 = vperm.xlu0 %2025, %v2314_v29   ;;  %1212 = vperm.xlu1 %2024, %v2232_v62   ;;  %v890_v10 = vpop.permute.xlu1 %889 }
 0x202   :  { %v2738_v40 = vadd.f32 %v1757_v41, %v2554_v25  ;;  %v935_v54 = vmul.f32 %v2715_v49, %v890_v10  ;;  %v2741_v51 = vpop.permute.xlu0 %946  ;;  %v810_v10 = vmul.f32 %v2712_v43, %v2655_v28 }
 0x203   :  { %3924 = vst [vmem:[#allocation80_spill] sm:$0xff] %v2741_v51  ;;  %v3965_v51 = vsub.s32 0, %v2166_v48 }
 0x204   :  { %v1759_v32 = vadd.f32 %v935_v54, %v806_v13 }
 0x205   :  { %1272 = vperm.xlu0 %2025, %v2328_v4   ;;  %1220 = vperm.xlu1 %2024, %v2246_v9   ;;  %v898_v50 = vpop.permute.xlu1 %897 }
 0x206   :  { %v2748_v52 = vadd.f32 %v1759_v32, %v2563_v57  ;;  %v937_v0 = vmul.f32 %v2715_v49, %v898_v50  ;;  %v2751_v41 = vpop.permute.xlu0 %958 }
 0x207   :  { %3926 = vst [vmem:[#allocation82_spill] sm:$0xff] %v2751_v41 }
 0x208   :  { %3925 = vst [vmem:[#allocation81_spill] sm:$0xff] %v2748_v52  ;;  %v1761_v25 = vadd.f32 %v937_v0, %v808_v42  ;;  %v2040_v0 = vmov 7  }
 0x209   :  { %1280 = vperm.xlu0 %2025, %v2342_v15   ;;  %1228 = vperm.xlu1 %2024, %v2260_v20   ;;  %v906_v47 = vpop.permute.xlu1 %905 }
 0x20a   :  { %v2758_v13 = vadd.f32 %v1761_v25, %v2572_v12  ;;  %v939_v37 = vmul.f32 %v2715_v49, %v906_v47  ;;  %v2761_v57 = vpop.permute.xlu0 %966 }
 0x20b   :  { %3928 = vst [vmem:[#allocation84_spill] sm:$0xff] %v2761_v57  ;;  %v2041_v57 = vmov 8  }
 0x20c   :  { %3927 = vst [vmem:[#allocation83_spill] sm:$0xff] %v2758_v13  ;;  %v1763_v54 = vadd.f32 %v939_v37, %v810_v10 }
 0x20d   :  { %1288 = vperm.xlu0 %2025, %v2354_v26   ;;  %1236 = vperm.xlu1 %2024, %v2274_v60  }
 0x20e   :  { %v2766_v32 = vadd.f32 %v1763_v54, %v2581_v14  ;;  %v2768_v50 = vpop.permute.xlu0 %974  ;;  %v2770_v42 = vpop.permute.xlu1 %942 }
 0x20f   :  { %3930 = vst [vmem:[#allocation86_spill] sm:$0xff] %v2768_v50  ;;  %3931 = vst [vmem:[#allocation87_spill] sm:$0xff] %v2770_v42 }
 0x210   :  { %3929 = vst [vmem:[#allocation85_spill] sm:$0xff] %v2766_v32 }
 0x211   :  { %1296 = vperm.xlu0 %2025, %v2361_v56   ;;  %1244 = vperm.xlu1 %2024, %v2288_v7  }
 0x212   :  { %v2774_v12 = vpop.permute.xlu0 %982  ;;  %v2776_v28 = vpop.permute.xlu1 %950 }
 0x213   :  { %3932 = vst [vmem:[#allocation88_spill] sm:$0xff] %v2774_v12  ;;  %3933 = vst [vmem:[#allocation89_spill] sm:$0xff] %v2776_v28 }
 0x215   :  { %2027 = vset.pattern.permute.xlu0 %v2040_v0  ;;  %1252 = vperm.xlu1 %2024, %v2302_v18  }
 0x216   :  { %1333 = vperm.xlu0 %2027, %v2217_v22   ;;  %v2780_v14 = vpop.permute.xlu0 %990  ;;  %v2782_v25 = vpop.permute.xlu1 %954 }
 0x217   :  { %3934 = vst [vmem:[#allocation90_spill] sm:$0xff] %v2780_v14  ;;  %3935 = vst [vmem:[#allocation91_spill] sm:$0xff] %v2782_v25 }
 0x219   :  { %1260 = vperm.xlu1 %2024, %v2316_v31  }
 0x21a   :  { %1345 = vperm.xlu0 %2027, %v2230_v61   ;;  %v2786_v47 = vpop.permute.xlu0 %998  ;;  %v2788_v10 = vpop.permute.xlu1 %962 }
 0x21b   :  { %3936 = vst [vmem:[#allocation92_spill] sm:$0xff] %v2786_v47  ;;  %3937 = vst [vmem:[#allocation93_spill] sm:$0xff] %v2788_v10 }
 0x21d   :  { %1268 = vperm.xlu1 %2024, %v2330_v5  }
 0x21e   :  { %1353 = vperm.xlu0 %2027, %v2244_v8   ;;  %v2792_v37 = vpop.permute.xlu0 %1006  ;;  %v2794_v54 = vpop.permute.xlu1 %970 }
 0x21f   :  { %3938 = vst [vmem:[#allocation94_spill] sm:$0xff] %v2792_v37  ;;  %3939 = vst [vmem:[#allocation95_spill] sm:$0xff] %v2794_v54 }
 0x221   :  { %1276 = vperm.xlu1 %2024, %v2344_v16  }
 0x222   :  { %1361 = vperm.xlu0 %2027, %v2258_v19   ;;  %v2798_v25 = vpop.permute.xlu0 %1014  ;;  %v2800_v28 = vpop.permute.xlu1 %978 }
 0x223   :  { %3940 = vst [vmem:[#allocation96_spill] sm:$0xff] %v2798_v25  ;;  %3941 = vst [vmem:[#allocation97_spill] sm:$0xff] %v2800_v28 }
 0x225   :  { %1284 = vperm.xlu1 %2024, %v2356_v27  }
 0x226   :  { %1369 = vperm.xlu0 %2027, %v2272_v45   ;;  %v2804_v10 = vpop.permute.xlu0 %1022  ;;  %v2806_v47 = vpop.permute.xlu1 %986 }
 0x227   :  { %3942 = vst [vmem:[#allocation98_spill] sm:$0xff] %v2804_v10  ;;  %3943 = vst [vmem:[#allocation99_spill] sm:$0xff] %v2806_v47 }
 0x229   :  { %1292 = vperm.xlu1 %2024, %v2363_v36  }
 0x22a   :  { %1377 = vperm.xlu0 %2027, %v2286_v6   ;;  %v2810_v54 = vpop.permute.xlu0 %1030  ;;  %v2812_v37 = vpop.permute.xlu1 %994 }
 0x22b   :  { %3944 = vst [vmem:[#allocation100_spill] sm:$0xff] %v2810_v54  ;;  %3945 = vst [vmem:[#allocation101_spill] sm:$0xff] %v2812_v37 }
 0x22d   :  { %2026 = vset.pattern.permute.xlu1 %v2040_v0 }
 0x22e   :  { %1385 = vperm.xlu0 %2027, %v2300_v17   ;;  %v2815_v28 = vpop.permute.xlu0 %1038  ;;  %1329 = vperm.xlu1 %2026, %v2208_v11   ;;  %v1003_v25 = vpop.permute.xlu1 %1002 }
 0x232   :  { %1393 = vperm.xlu0 %2027, %v2314_v29   ;;  %1337 = vperm.xlu1 %2026, %v2219_v23   ;;  %v2820_v47 = vpop.permute.xlu1 %1010 }
 0x233   :  { %v2822_v10 = vpop.permute.xlu0 %1075 }
 0x234   :  { %3946 = vst [vmem:[#allocation102_spill] sm:$0xff] %v2822_v10 }
 0x236   :  { %1401 = vperm.xlu0 %2027, %v2328_v4   ;;  %1341 = vperm.xlu1 %2026, %v2232_v62   ;;  %v2826_v0 = vpop.permute.xlu1 %1018 }
 0x237   :  { %v2828_v37 = vpop.permute.xlu0 %1087 }
 0x238   :  { %3947 = vst [vmem:[#allocation103_spill] sm:$0xff] %v2828_v37 }
 0x23a   :  { %1409 = vperm.xlu0 %2027, %v2342_v15   ;;  %1349 = vperm.xlu1 %2026, %v2246_v9   ;;  %v2832_v54 = vpop.permute.xlu1 %1026 }
 0x23b   :  { %v2834_v42 = vpop.permute.xlu0 %1095 }
 0x23c   :  { %3948 = vst [vmem:[#allocation104_spill] sm:$0xff] %v2834_v42 }
 0x23e   :  { %1417 = vperm.xlu0 %2027, %v2354_v26   ;;  %1357 = vperm.xlu1 %2026, %v2260_v20   ;;  %v2838_v14 = vpop.permute.xlu1 %1034 }
 0x23f   :  { %v2840_v12 = vpop.permute.xlu0 %1103 }
 0x240   :  { %3949 = vst [vmem:[#allocation105_spill] sm:$0xff] %v2840_v12 }
 0x242   :  { %1425 = vperm.xlu0 %2027, %v2361_v56   ;;  %1365 = vperm.xlu1 %2026, %v2274_v60  }
 0x243   :  { %v2844_v34 = vpop.permute.xlu0 %1111  ;;  %v2846_v50 = vpop.permute.xlu1 %1071 }
 0x244   :  { %3950 = vst [vmem:[#allocation106_spill] sm:$0xff] %v2844_v34  ;;  %3951 = vst [vmem:[#allocation107_spill] sm:$0xff] %v2846_v50 }
 0x246   :  { %2029 = vset.pattern.permute.xlu0 %v2041_v57  ;;  %1373 = vperm.xlu1 %2026, %v2288_v7  }
 0x247   :  { %1462 = vperm.xlu0 %2029, %v2217_v22   ;;  %v2850_v42 = vpop.permute.xlu0 %1119  ;;  %v2852_v41 = vpop.permute.xlu1 %1079 }
 0x248   :  { %3952 = vst [vmem:[#allocation108_spill] sm:$0xff] %v2850_v42  ;;  %3953 = vst [vmem:[#allocation109_spill] sm:$0xff] %v2852_v41 }
 0x24a   :  { %1381 = vperm.xlu1 %2026, %v2302_v18  }
 0x24b   :  { %1474 = vperm.xlu0 %2029, %v2230_v61   ;;  %v2856_v12 = vpop.permute.xlu0 %1127  ;;  %v2858_v37 = vpop.permute.xlu1 %1083 }
 0x24c   :  { %3954 = vst [vmem:[#allocation110_spill] sm:$0xff] %v2856_v12  ;;  %3955 = vst [vmem:[#allocation111_spill] sm:$0xff] %v2858_v37 }
 0x24e   :  { %1389 = vperm.xlu1 %2026, %v2316_v31  }
 0x24f   :  { %1482 = vperm.xlu0 %2029, %v2244_v8   ;;  %v2862_v50 = vpop.permute.xlu0 %1135  ;;  %v2864_v34 = vpop.permute.xlu1 %1091 }
 0x250   :  { %3956 = vst [vmem:[#allocation112_spill] sm:$0xff] %v2862_v50  ;;  %3957 = vst [vmem:[#allocation113_spill] sm:$0xff] %v2864_v34 }
 0x252   :  { %1397 = vperm.xlu1 %2026, %v2330_v5  }
 0x253   :  { %1490 = vperm.xlu0 %2029, %v2258_v19   ;;  %v2868_v41 = vpop.permute.xlu0 %1143  ;;  %v2870_v42 = vpop.permute.xlu1 %1099 }
 0x254   :  { %3958 = vst [vmem:[#allocation114_spill] sm:$0xff] %v2868_v41  ;;  %3959 = vst [vmem:[#allocation115_spill] sm:$0xff] %v2870_v42  ;;  %v1043_v41 = vsub.s32 7, %v2166_v48  ;;  %v2889_v42 = vld [vmem:[%s3825_s1 + $0x8] sm:$0x3f] }
 0x255   :  { %v2904_v10 = vrot.slane %v2889_v42, %v3965_v51 }
 0x256   :  { %1405 = vperm.xlu1 %2026, %v2344_v16  }
 0x257   :  { %1498 = vperm.xlu0 %2029, %v2272_v45   ;;  %v2874_v37 = vpop.permute.xlu0 %1151  ;;  %v2876_v12 = vpop.permute.xlu1 %1107 }
 0x258   :  { %3960 = vst [vmem:[#allocation116_spill] sm:$0xff] %v2874_v37  ;;  %3961 = vst [vmem:[#allocation117_spill] sm:$0xff] %v2876_v12 }
 0x25a   :  { %1413 = vperm.xlu1 %2026, %v2356_v27  }
 0x25b   :  { %1506 = vperm.xlu0 %2029, %v2286_v6   ;;  %v2880_v34 = vpop.permute.xlu0 %1159  ;;  %v2882_v50 = vpop.permute.xlu1 %1115 }
 0x25c   :  { %3962 = vst [vmem:[#allocation118_spill] sm:$0xff] %v2880_v34  ;;  %3963 = vst [vmem:[#allocation119_spill] sm:$0xff] %v2882_v50  ;;  %v2032_v34 = vld [vmem:[%s3825_s1] sm:$0xff] }
 0x25d   :  { %v2899_v50 = vrot.slane %v2032_v34, %v1043_v41 }
 0x25e   :  { %1421 = vperm.xlu1 %2026, %v2363_v36  }
 0x25f   :  { %1514 = vperm.xlu0 %2029, %v2300_v17   ;;  %v2892_v12 = vpop.permute.xlu0 %1167  ;;  %v2894_v37 = vpop.permute.xlu1 %1123  ;;  %v1060_v49 = vmul.f32 %v2899_v50, %v1003_v25  ;;  %v1062_v51 = vmul.f32 %v2899_v50, %v2820_v47 }
 0x260   :  { %3964 = vst [vmem:[#allocation120_spill] sm:$0xff] %v2894_v37 }
 0x262   :  { %2028 = vset.pattern.permute.xlu1 %v2041_v57 }
 0x263   :  { %1522 = vperm.xlu0 %2029, %v2314_v29   ;;  %1458 = vperm.xlu1 %2028, %v2208_v11   ;;  %v1132_v43 = vpop.permute.xlu1 %1131 }
 0x264   :  { %v1189_v37 = vmul.f32 %v2904_v10, %v1132_v43  ;;  %v2910_v32 = vpop.permute.xlu0 %1204 }
 0x266   :  { %v2912_v13 = vadd.f32 %v1189_v37, %v1060_v49  ;;  %v1064_v49 = vmul.f32 %v2899_v50, %v2826_v0 }
 0x267   :  { %1530 = vperm.xlu0 %2029, %v2328_v4   ;;  %1466 = vperm.xlu1 %2028, %v2219_v23   ;;  %v1140_v34 = vpop.permute.xlu1 %1139 }
 0x268   :  { %v1191_v41 = vmul.f32 %v2904_v10, %v1140_v34  ;;  %v2919_v57 = vpop.permute.xlu0 %1216  ;;  %v1066_v34 = vmul.f32 %v2899_v50, %v2832_v54  ;;  %v2042_v54 = vmov 9  }
 0x26a   :  { %v2921_v38 = vadd.f32 %v1191_v41, %v1062_v51 }
 0x26b   :  { %1538 = vperm.xlu0 %2029, %v2342_v15   ;;  %1470 = vperm.xlu1 %2028, %v2232_v62   ;;  %v1148_v43 = vpop.permute.xlu1 %1147 }
 0x26c   :  { %v1193_v25 = vmul.f32 %v2904_v10, %v1148_v43  ;;  %v2928_v37 = vpop.permute.xlu0 %1224  ;;  %v1068_v43 = vmul.f32 %v2899_v50, %v2838_v14 }
 0x26e   :  { %v2930_v44 = vadd.f32 %v1193_v25, %v1064_v49 }
 0x26f   :  { %1546 = vperm.xlu0 %2029, %v2354_v26   ;;  %1478 = vperm.xlu1 %2028, %v2246_v9   ;;  %v1156_v47 = vpop.permute.xlu1 %1155 }
 0x270   :  { %v1195_v51 = vmul.f32 %v2904_v10, %v1156_v47  ;;  %v2937_v41 = vpop.permute.xlu0 %1232 }
 0x272   :  { %v2939_v3 = vadd.f32 %v1195_v51, %v1066_v34 }
 0x273   :  { %1554 = vperm.xlu0 %2029, %v2361_v56   ;;  %1486 = vperm.xlu1 %2028, %v2260_v20   ;;  %v1164_v0 = vpop.permute.xlu1 %1163 }
 0x274   :  { %3966 = vst [vmem:[#allocation121_spill] sm:$0xff] %v2939_v3  ;;  %v1197_v49 = vmul.f32 %v2904_v10, %v1164_v0  ;;  %v2946_v25 = vpop.permute.xlu0 %1240  ;;  %v3973_v3 = vsub.s32 2, %v2166_v48 }
 0x276   :  { %v2948_v24 = vadd.f32 %v1197_v49, %v1068_v43 }
 0x277   :  { %2031 = vset.pattern.permute.xlu0 %v2042_v54  ;;  %1494 = vperm.xlu1 %2028, %v2274_v60  }
 0x278   :  { %3967 = vst [vmem:[#allocation122_spill] sm:$0xff] %v2948_v24  ;;  %1591 = vperm.xlu0 %2031, %v2217_v22   ;;  %v2952_v47 = vpop.permute.xlu0 %1248  ;;  %v2954_v34 = vpop.permute.xlu1 %1200 }
 0x279   :  { %3968 = vst [vmem:[#allocation123_spill] sm:$0xff] %v2954_v34 }
 0x27b   :  { %1502 = vperm.xlu1 %2028, %v2288_v7  }
 0x27c   :  { %1603 = vperm.xlu0 %2031, %v2230_v61   ;;  %v2958_v14 = vpop.permute.xlu0 %1256  ;;  %v2960_v51 = vpop.permute.xlu1 %1208 }
 0x27d   :  { %3969 = vst [vmem:[#allocation124_spill] sm:$0xff] %v2960_v51 }
 0x27f   :  { %1510 = vperm.xlu1 %2028, %v2302_v18  }
 0x280   :  { %1611 = vperm.xlu0 %2031, %v2244_v8   ;;  %v2964_v0 = vpop.permute.xlu0 %1264  ;;  %v2966_v43 = vpop.permute.xlu1 %1212 }
 0x281   :  { %3970 = vst [vmem:[#allocation125_spill] sm:$0xff] %v2966_v43 }
 0x283   :  { %1518 = vperm.xlu1 %2028, %v2316_v31  }
 0x284   :  { %1619 = vperm.xlu0 %2031, %v2258_v19   ;;  %v2970_v22 = vpop.permute.xlu0 %1272  ;;  %v2972_v49 = vpop.permute.xlu1 %1220 }
 0x287   :  { %1526 = vperm.xlu1 %2028, %v2330_v5  }
 0x288   :  { %1627 = vperm.xlu0 %2031, %v2272_v45   ;;  %v2976_v61 = vpop.permute.xlu0 %1280  ;;  %v2978_v51 = vpop.permute.xlu1 %1228  ;;  %v3971_v45 = vsub.s32 1, %v2166_v48 }
 0x28a   :  { %v2995_v24 = vrot.slane %v2889_v42, %v3971_v45 }
 0x28b   :  { %1534 = vperm.xlu1 %2028, %v2344_v16  }
 0x28c   :  { %1635 = vperm.xlu0 %2031, %v2286_v6   ;;  %v2982_v8 = vpop.permute.xlu0 %1288  ;;  %v2984_v43 = vpop.permute.xlu1 %1236  ;;  %3972 = vst [vmem:[#allocation126_spill] sm:$0xff] %v2995_v24  ;;  %v3000_v6 = vrot.slane %v2889_v42, %v3973_v3  ;;  %v1304_v21 = vmul.f32 %v2995_v24, %v2910_v32 }
 0x28e   :  { %3974 = vst [vmem:[#allocation127_spill] sm:$0xff] %v3000_v6 }
 0x28f   :  { %1542 = vperm.xlu1 %2028, %v2356_v27  }
 0x290   :  { %1643 = vperm.xlu0 %2031, %v2300_v17   ;;  %v2988_v19 = vpop.permute.xlu0 %1296  ;;  %v2990_v34 = vpop.permute.xlu1 %1244 }
 0x293   :  { %1550 = vperm.xlu1 %2028, %v2363_v36  }
 0x294   :  { %1651 = vperm.xlu0 %2031, %v2314_v29   ;;  %v3004_v46 = vpop.permute.xlu1 %1252  ;;  %v1307_v29 = vmul.f32 %v2995_v24, %v2919_v57 }
 0x295   :  { %v1334_v17 = vpop.permute.xlu0 %1333 }
 0x296   :  { %v1433_v2 = vmul.f32 %v3000_v6, %v1334_v17 }
 0x297   :  { %2030 = vset.pattern.permute.xlu1 %v2042_v54 }
 0x298   :  { %v3009_v45 = vadd.f32 %v1433_v2, %v1304_v21  ;;  %1659 = vperm.xlu0 %2031, %v2328_v4   ;;  %1587 = vperm.xlu1 %2030, %v2208_v11   ;;  %v3013_v3 = vpop.permute.xlu1 %1260  ;;  %v1309_v11 = vmul.f32 %v2995_v24, %v2928_v37 }
 0x299   :  { %v1346_v1 = vpop.permute.xlu0 %1345 }
 0x29a   :  { %v1436_v63 = vmul.f32 %v3000_v6, %v1346_v1 }
 0x29c   :  { %v3018_v52 = vadd.f32 %v1436_v63, %v1307_v29  ;;  %1667 = vperm.xlu0 %2031, %v2342_v15   ;;  %1595 = vperm.xlu1 %2030, %v2219_v23   ;;  %v3022_v2 = vpop.permute.xlu1 %1268  ;;  %v1311_v23 = vmul.f32 %v2995_v24, %v2937_v41 }
 0x29d   :  { %v1354_v21 = vpop.permute.xlu0 %1353 }
 0x29e   :  { %v1438_v4 = vmul.f32 %v3000_v6, %v1354_v21 }
 0x2a0   :  { %v3027_v32 = vadd.f32 %v1438_v4, %v1309_v11  ;;  %1675 = vperm.xlu0 %2031, %v2354_v26   ;;  %1599 = vperm.xlu1 %2030, %v2232_v62   ;;  %v3031_v63 = vpop.permute.xlu1 %1276  ;;  %v1313_v62 = vmul.f32 %v2995_v24, %v2946_v25  ;;  %v1317_v4 = vmul.f32 %v2995_v24, %v2958_v14 }
 0x2a1   :  { %v1362_v1 = vpop.permute.xlu0 %1361 }
 0x2a2   :  { %v1440_v15 = vmul.f32 %v3000_v6, %v1362_v1 }
 0x2a4   :  { %v3036_v57 = vadd.f32 %v1440_v15, %v1311_v23  ;;  %1683 = vperm.xlu0 %2031, %v2361_v56   ;;  %1607 = vperm.xlu1 %2030, %v2246_v9   ;;  %v3040_v37 = vpop.permute.xlu1 %1284  ;;  %v1315_v56 = vmul.f32 %v2995_v24, %v2952_v47  ;;  %v1319_v15 = vmul.f32 %v2995_v24, %v2964_v0 }
 0x2a5   :  { %v1370_v54 = vpop.permute.xlu0 %1369 }
 0x2a6   :  { %v1442_v26 = vmul.f32 %v3000_v6, %v1370_v54 }
 0x2a8   :  { %v3045_v17 = vadd.f32 %v1442_v26, %v1313_v62  ;;  %1615 = vperm.xlu1 %2030, %v2260_v20   ;;  %v3048_v41 = vpop.permute.xlu1 %1292  ;;  %v1321_v26 = vmul.f32 %v2995_v24, %v2970_v22 }
 0x2a9   :  { %v1378_v29 = vpop.permute.xlu0 %1377 }
 0x2aa   :  { %v1444_v9 = vmul.f32 %v3000_v6, %v1378_v29 }
 0x2ac   :  { %v3053_v21 = vadd.f32 %v1444_v9, %v1315_v56  ;;  %1623 = vperm.xlu1 %2030, %v2274_v60   ;;  %v1308_v9 = vmul.f32 %v2995_v24, %v2972_v49  ;;  %v1325_v49 = vmul.f32 %v2995_v24, %v2982_v8  ;;  %v1312_v8 = vmul.f32 %v2995_v24, %v2984_v43 }
 0x2ad   :  { %v1386_v11 = vpop.permute.xlu0 %1385  ;;  %v3056_v25 = vpop.permute.xlu1 %1329 }
 0x2ae   :  { %3975 = vst [vmem:[#allocation128_spill] sm:$0xff] %v3053_v21  ;;  %3976 = vst [vmem:[#allocation129_spill] sm:$0xff] %v3056_v25  ;;  %v1446_v20 = vmul.f32 %v3000_v6, %v1386_v11  ;;  %v4079_v21 = vld [vmem:[#allocation64_spill] sm:$0xff] }
 0x2b0   :  { %v3061_v1 = vadd.f32 %v1446_v20, %v1317_v4  ;;  %1631 = vperm.xlu1 %2030, %v2288_v7  }
 0x2b1   :  { %v1394_v23 = vpop.permute.xlu0 %1393  ;;  %v3064_v47 = vpop.permute.xlu1 %1337 }
 0x2b2   :  { %3977 = vst [vmem:[#allocation130_spill] sm:$0xff] %v3061_v1  ;;  %3978 = vst [vmem:[#allocation131_spill] sm:$0xff] %v3064_v47  ;;  %v1448_v60 = vmul.f32 %v3000_v6, %v1394_v23  ;;  %v4036_v47 = vld [vmem:[#allocation35_spill] sm:$0xff]  ;;  %v4073_v1 = vld [vmem:[#allocation53_spill] sm:$0xff] }
 0x2b4   :  { %v3069_v54 = vadd.f32 %v1448_v60, %v1319_v15  ;;  %1639 = vperm.xlu1 %2030, %v2302_v18   ;;  %v1323_v18 = vmul.f32 %v2995_v24, %v2976_v61  ;;  %v1310_v15 = vmul.f32 %v2995_v24, %v2978_v51 }
 0x2b5   :  { %v1402_v62 = vpop.permute.xlu0 %1401  ;;  %v3072_v14 = vpop.permute.xlu1 %1341 }
 0x2b6   :  { %3979 = vst [vmem:[#allocation132_spill] sm:$0xff] %v3069_v54  ;;  %3980 = vst [vmem:[#allocation133_spill] sm:$0xff] %v3072_v14  ;;  %v1450_v7 = vmul.f32 %v3000_v6, %v1402_v62  ;;  %v1198_v62 = vmul.f32 %v2904_v10, %v2892_v12  ;;  %v4033_v14 = vld [vmem:[#allocation28_spill] sm:$0xff] }
 0x2b8   :  { %v3077_v29 = vadd.f32 %v1450_v7, %v1321_v26  ;;  %1647 = vperm.xlu1 %2030, %v2316_v31  }
 0x2b9   :  { %v1410_v56 = vpop.permute.xlu0 %1409  ;;  %v1350_v0 = vpop.permute.xlu1 %1349 }
 0x2ba   :  { %3981 = vst [vmem:[#allocation134_spill] sm:$0xff] %v3077_v29  ;;  %v1452_v11 = vmul.f32 %v3000_v6, %v1410_v56  ;;  %v1437_v4 = vmul.f32 %v3000_v6, %v1350_v0  ;;  %v1327_v0 = vmul.f32 %v2995_v24, %v2988_v19  ;;  %v4032_v29 = vld [vmem:[#allocation27_spill] sm:$0xff] }
 0x2bc   :  { %v3086_v20 = vadd.f32 %v1452_v11, %v1323_v18  ;;  %v3088_v22 = vadd.f32 %v1437_v4, %v1308_v9  ;;  %1655 = vperm.xlu1 %2030, %v2330_v5   ;;  %v1069_v5 = vmul.f32 %v2899_v50, %v2815_v28  ;;  %v1314_v28 = vmul.f32 %v2995_v24, %v2990_v34 }
 0x2bd   :  { %v1418_v23 = vpop.permute.xlu0 %1417  ;;  %v1358_v31 = vpop.permute.xlu1 %1357 }
 0x2be   :  { %3982 = vst [vmem:[#allocation135_spill] sm:$0xff] %v3086_v20  ;;  %3983 = vst [vmem:[#allocation136_spill] sm:$0xff] %v3088_v22  ;;  %v1454_v61 = vmul.f32 %v3000_v6, %v1418_v23  ;;  %v1439_v60 = vmul.f32 %v3000_v6, %v1358_v31  ;;  %v1789_v18 = vadd.f32 %v1198_v62, %v1069_v5  ;;  %v4029_v20 = vld [vmem:[#allocation85_spill] sm:$0xff] }
 0x2bf   :  { %v1318_v62 = vmul.f32 %v2995_v24, %v3013_v3 }
 0x2c0   :  { %v3099_v26 = vadd.f32 %v1454_v61, %v1325_v49  ;;  %v3101_v7 = vadd.f32 %v1439_v60, %v1310_v15  ;;  %1663 = vperm.xlu1 %2030, %v2344_v16   ;;  %v1316_v49 = vmul.f32 %v2995_v24, %v3004_v46 }
 0x2c1   :  { %v1426_v51 = vpop.permute.xlu0 %1425  ;;  %v1366_v56 = vpop.permute.xlu1 %1365 }
 0x2c2   :  { %3984 = vst [vmem:[#allocation137_spill] sm:$0xff] %v3099_v26  ;;  %3985 = vst [vmem:[#allocation138_spill] sm:$0xff] %v3101_v7  ;;  %v1456_v9 = vmul.f32 %v3000_v6, %v1426_v51  ;;  %v1441_v12 = vmul.f32 %v3000_v6, %v1366_v56 }
 0x2c4   :  { %v1814_v11 = vadd.f32 %v1456_v9, %v1327_v0  ;;  %v3112_v4 = vadd.f32 %v1441_v12, %v1312_v8  ;;  %1671 = vperm.xlu1 %2030, %v2356_v27   ;;  %v1320_v8 = vmul.f32 %v2995_v24, %v3022_v2 }
 0x2c5   :  { %v1374_v16 = vpop.permute.xlu1 %1373 }
 0x2c6   :  { %3986 = vst [vmem:[#allocation139_spill] sm:$0xff] %v3112_v4  ;;  %v3117_v23 = vadd.f32 %v1814_v11, %v1789_v18  ;;  %v1443_v43 = vmul.f32 %v3000_v6, %v1374_v16  ;;  %v3120_v31 = vpop.permute.xlu0 %1462  ;;  %v1322_v11 = vmul.f32 %v2995_v24, %v3031_v63  ;;  %v4016_v4 = vld [vmem:[#allocation14_spill] sm:$0xff] }
 0x2c8   :  { %3987 = vst [vmem:[#allocation140_spill] sm:$0xff] %v3117_v23  ;;  %v3122_v19 = vadd.f32 %v1443_v43, %v1314_v28  ;;  %1679 = vperm.xlu1 %2030, %v2363_v36  }
 0x2c9   :  { %v1382_v15 = vpop.permute.xlu1 %1381 }
 0x2ca   :  { %3988 = vst [vmem:[#allocation141_spill] sm:$0xff] %v3122_v19  ;;  %v1445_v27 = vmul.f32 %v3000_v6, %v1382_v15  ;;  %v3128_v61 = vpop.permute.xlu0 %1474  ;;  %v4015_v19 = vld [vmem:[#allocation13_spill] sm:$0xff] }
 0x2cc   :  { %v3130_v60 = vadd.f32 %v1445_v27, %v1316_v49  ;;  %v3993_v49 = vsub.s32 5, %v2166_v48  ;;  %v1324_v27 = vmul.f32 %v2995_v24, %v3040_v37  ;;  %v532_v37 = vmul.f32 %v2532_v35, %v2419_v30 }
 0x2cd   :  { %v1390_v34 = vpop.permute.xlu1 %1389 }
 0x2ce   :  { %3989 = vst [vmem:[#allocation142_spill] sm:$0xff] %v3130_v60  ;;  %v1447_v5 = vmul.f32 %v3000_v6, %v1390_v34  ;;  %v3135_v51 = vpop.permute.xlu0 %1482 }
 0x2d0   :  { %v1805_v56 = vadd.f32 %v1447_v5, %v1318_v62  ;;  %v529_v62 = vmul.f32 %v2532_v35, %v2407_v55  ;;  %v531_v5 = vmul.f32 %v2532_v35, %v2413_v59  ;;  %v3997_v55 = vld [vmem:[#allocation2_spill] sm:$0xff]  ;;  %v3999_v59 = vld [vmem:[#allocation4_spill] sm:$0xff] }
 0x2d1   :  { %v1398_v36 = vpop.permute.xlu1 %1397 }
 0x2d2   :  { %v1880_v46 = vadd.f32 %v1805_v56, %v2912_v13  ;;  %v1449_v0 = vmul.f32 %v3000_v6, %v1398_v36  ;;  %v3141_v9 = vpop.permute.xlu0 %1490  ;;  %v533_v56 = vmul.f32 %v2532_v35, %v2417_v39  ;;  %v4000_v39 = vld [vmem:[#allocation16_spill] sm:$0xff] }
 0x2d4   :  { %v1807_v12 = vadd.f32 %v1449_v0, %v1320_v8  ;;  %v3144_v18 = vadd.f32 %v1880_v46, %v2730_v53  ;;  %v3158_v53 = vrot.slane %v2889_v42, %v3993_v49  ;;  %v3995_v8 = vld [vmem:[#allocation81_spill] sm:$0xff]  ;;  %v534_v0 = vmul.f32 %v2532_v35, %v3997_v55  ;;  %v4006_v55 = vld [vmem:[#allocation6_spill] sm:$0xff] }
 0x2d5   :  { %v1406_v3 = vpop.permute.xlu1 %1405 }
 0x2d6   :  { %3990 = vst [vmem:[#allocation143_spill] sm:$0xff] %v3144_v18  ;;  %v1882_v16 = vadd.f32 %v1807_v12, %v2921_v38  ;;  %v1451_v28 = vmul.f32 %v3000_v6, %v1406_v3  ;;  %v3150_v43 = vpop.permute.xlu0 %1498  ;;  %v536_v3 = vmul.f32 %v2532_v35, %v3999_v59  ;;  %v4007_v59 = vld [vmem:[#allocation7_spill] sm:$0xff] }
 0x2d7   :  { %3991 = vst [vmem:[#allocation144_spill] sm:$0xff] %v3150_v43  ;;  %v4012_v18 = vld [vmem:[#allocation83_spill] sm:$0xff] }
 0x2d8   :  { %v1809_v2 = vadd.f32 %v1451_v28, %v1322_v11  ;;  %v3153_v13 = vadd.f32 %v1882_v16, %v2738_v40  ;;  %v530_v40 = vmul.f32 %v2532_v35, %v2411_v58  ;;  %v3998_v58 = vld [vmem:[#allocation3_spill] sm:$0xff]  ;;  %v4001_v11 = vld [vmem:[#allocation33_spill] sm:$0xff] }
 0x2d9   :  { %v1414_v15 = vpop.permute.xlu1 %1413  ;;  %v537_v12 = vmul.f32 %v2532_v35, %v3998_v58  ;;  %v659_v16 = vmul.f32 %v4001_v11, %v4000_v39  ;;  %v4002_v28 = vld [vmem:[#allocation17_spill] sm:$0xff]  ;;  %v538_v58 = vmul.f32 %v2532_v35, %v4006_v55  ;;  %v541_v39 = vmul.f32 %v2532_v35, %v4007_v59 }
 0x2da   :  { %3992 = vst [vmem:[#allocation145_spill] sm:$0xff] %v3153_v13  ;;  %v1884_v63 = vadd.f32 %v1809_v2, %v2930_v44  ;;  %v1453_v38 = vmul.f32 %v3000_v6, %v1414_v15  ;;  %v3164_v34 = vpop.permute.xlu0 %1506  ;;  %v535_v44 = vmul.f32 %v2532_v35, %v2423_v33  ;;  %v658_v33 = vmul.f32 %v4001_v11, %v4002_v28  ;;  %v4003_v15 = vld [vmem:[#allocation121_spill] sm:$0xff] }
 0x2db   :  { %3994 = vst [vmem:[#allocation146_spill] sm:$0xff] %v3164_v34  ;;  %v1326_v2 = vmul.f32 %v2995_v24, %v3048_v41  ;;  %v4010_v41 = vld [vmem:[#allocation9_spill] sm:$0xff]  ;;  %v549_v59 = vmul.f32 %v2532_v35, %v4015_v19  ;;  %v4022_v19 = vld [vmem:[#allocation19_spill] sm:$0xff] }
 0x2dc   :  { %v1811_v36 = vadd.f32 %v1453_v38, %v1324_v27  ;;  %v3179_v46 = vadd.f32 %v1884_v63, %v3995_v8  ;;  %v4005_v38 = vld [vmem:[#allocation5_spill] sm:$0xff]  ;;  %v3224_v7 = vadd.f32 %v658_v33, %v529_v62  ;;  %v4025_v62 = vld [vmem:[#allocation22_spill] sm:$0xff]  ;;  %v4026_v33 = vld [vmem:[#allocation23_spill] sm:$0xff] }
 0x2dd   :  { %v1422_v30 = vpop.permute.xlu1 %1421  ;;  %v539_v8 = vmul.f32 %v2532_v35, %v4005_v38  ;;  %v4014_v38 = vld [vmem:[#allocation12_spill] sm:$0xff]  ;;  %v4078_v34 = vld [vmem:[#allocation63_spill] sm:$0xff] }
 0x2de   :  { %3996 = vst [vmem:[#allocation81_spill] sm:$0xff] %v3179_v46  ;;  %v1886_v49 = vadd.f32 %v1811_v36, %v4003_v15  ;;  %v1455_v27 = vmul.f32 %v3000_v6, %v1422_v30  ;;  %v3195_v63 = vpop.permute.xlu0 %1514  ;;  %v4008_v46 = vld [vmem:[#allocation8_spill] sm:$0xff]  ;;  %v543_v36 = vmul.f32 %v2532_v35, %v4010_v41  ;;  %v4011_v15 = vld [vmem:[#allocation11_spill] sm:$0xff]  ;;  %v547_v55 = vmul.f32 %v2532_v35, %v4014_v38 }
 0x2df   :  { %4004 = vst [vmem:[#allocation2_spill] sm:$0xff] %v3195_v63  ;;  %v3205_v28 = vmul.f32 %v2532_v35, %v4008_v46  ;;  %v545_v30 = vmul.f32 %v2532_v35, %v4011_v15  ;;  %v551_v46 = vmul.f32 %v2532_v35, %v4016_v4  ;;  %v3222_v41 = vadd.f32 %v659_v16, %v530_v40  ;;  %v4023_v4 = vld [vmem:[#allocation20_spill] sm:$0xff] }
 0x2e0   :  { %v1813_v13 = vadd.f32 %v1455_v27, %v1326_v2  ;;  %v3212_v60 = vadd.f32 %v1886_v49, %v4012_v18  ;;  %v4018_v2 = vld [vmem:[#allocation18_spill] sm:$0xff]  ;;  %v664_v22 = vmul.f32 %v4001_v11, %v4023_v4  ;;  %v666_v16 = vmul.f32 %v4001_v11, %v4025_v62 }
 0x2e1   :  { %4009 = vst [vmem:[#allocation3_spill] sm:$0xff] %v3205_v28  ;;  %v4017_v28 = vld [vmem:[#allocation15_spill] sm:$0xff]  ;;  %v662_v18 = vmul.f32 %v4001_v11, %v4018_v2  ;;  %v4019_v49 = vld [vmem:[#allocation122_spill] sm:$0xff]  ;;  %v663_v2 = vmul.f32 %v4001_v11, %v4026_v33  ;;  %v672_v62 = vmul.f32 %v4001_v11, %v4033_v14 }
 0x2e2   :  { %4013 = vst [vmem:[#allocation4_spill] sm:$0xff] %v3212_v60  ;;  %v553_v23 = vmul.f32 %v2532_v35, %v4017_v28  ;;  %v1888_v27 = vadd.f32 %v1813_v13, %v4019_v49  ;;  %v3229_v15 = vpop.permute.xlu0 %1522  ;;  %v3231_v38 = vpop.permute.xlu1 %1458  ;;  %v660_v60 = vmul.f32 %v4001_v11, %v4022_v19  ;;  %v4024_v28 = vld [vmem:[#allocation21_spill] sm:$0xff]  ;;  %v4027_v13 = vld [vmem:[#allocation24_spill] sm:$0xff]  ;;  %v3272_v14 = vadd.f32 %v664_v22, %v535_v44 }
 0x2e3   :  { %4020 = vst [vmem:[#allocation16_spill] sm:$0xff] %v3229_v15  ;;  %4021 = vst [vmem:[#allocation17_spill] sm:$0xff] %v3231_v38  ;;  %v661_v40 = vmul.f32 %v4001_v11, %v4024_v28  ;;  %v668_v49 = vmul.f32 %v4001_v11, %v4027_v13  ;;  %v4028_v35 = vld [vmem:[#allocation25_spill] sm:$0xff]  ;;  %v4031_v38 = vld [vmem:[#allocation26_spill] sm:$0xff]  ;;  %v667_v28 = vmul.f32 %v4001_v11, %v4032_v29 }
 0x2e4   :  { %v665_v26 = vmul.f32 %v4001_v11, %v4028_v35  ;;  %v3248_v19 = vadd.f32 %v1888_v27, %v4029_v20  ;;  %v670_v4 = vmul.f32 %v4001_v11, %v4031_v38  ;;  %v4034_v15 = vld [vmem:[#allocation30_spill] sm:$0xff]  ;;  %v3258_v54 = vadd.f32 %v662_v18, %v533_v56  ;;  %v4037_v27 = vld [vmem:[#allocation36_spill] sm:$0xff]  ;;  %v4040_v56 = vld [vmem:[#allocation37_spill] sm:$0xff] }
 0x2e5   :  { %v674_v33 = vmul.f32 %v4001_v11, %v4034_v15  ;;  %v4035_v13 = vld [vmem:[#allocation34_spill] sm:$0xff]  ;;  %v678_v20 = vmul.f32 %v4001_v11, %v4036_v47  ;;  %v680_v38 = vmul.f32 %v4001_v11, %v4037_v27  ;;  %v3270_v63 = vadd.f32 %v660_v60, %v531_v5 }
 0x2e6   :  { %4030 = vst [vmem:[#allocation121_spill] sm:$0xff] %v3248_v19  ;;  %v676_v35 = vmul.f32 %v4001_v11, %v4035_v13  ;;  %v3266_v19 = vpop.permute.xlu0 %1530  ;;  %v3268_v29 = vpop.permute.xlu1 %1466  ;;  %v3274_v15 = vadd.f32 %v661_v40, %v532_v37  ;;  %v682_v18 = vmul.f32 %v4001_v11, %v4040_v56  ;;  %v3278_v13 = vadd.f32 %v666_v16, %v537_v12  ;;  %v4047_v12 = vld [vmem:[#allocation77_spill] sm:$0xff]  ;;  %v4054_v16 = vld [vmem:[#allocation40_spill] sm:$0xff] }
 0x2e7   :  { %4038 = vst [vmem:[#allocation5_spill] sm:$0xff] %v3266_v19  ;;  %4039 = vst [vmem:[#allocation6_spill] sm:$0xff] %v3268_v29  ;;  %v3280_v24 = vadd.f32 %v663_v2, %v534_v0  ;;  %v3282_v47 = vadd.f32 %v668_v49, %v539_v8  ;;  %v3284_v27 = vadd.f32 %v665_v26, %v536_v3  ;;  %v4046_v0 = vld [vmem:[#allocation58_spill] sm:$0xff] }
 0x2e8   :  { %v3286_v19 = vadd.f32 %v670_v4, %v541_v39  ;;  %v3288_v29 = vadd.f32 %v667_v28, %v538_v58  ;;  %v3290_v60 = vadd.f32 %v672_v62, %v543_v36  ;;  %v3292_v22 = vadd.f32 %v674_v33, %v545_v30  ;;  %v4051_v58 = vld [vmem:[#allocation38_spill] sm:$0xff]  ;;  %v4052_v39 = vld [vmem:[#allocation76_spill] sm:$0xff]  ;;  %v4053_v30 = vld [vmem:[#allocation39_spill] sm:$0xff] }
 0x2e9   :  { %v3294_v5 = vadd.f32 %v676_v35, %v547_v55  ;;  %v3296_v37 = vadd.f32 %v678_v20, %v549_v59  ;;  %v3298_v44 = vadd.f32 %v680_v38, %v551_v46  ;;  %v917_v8 = vmul.f32 %v4047_v12, %v4046_v0  ;;  %v4055_v46 = vld [vmem:[#allocation41_spill] sm:$0xff]  ;;  %v4056_v49 = vld [vmem:[#allocation42_spill] sm:$0xff]  ;;  %v4057_v28 = vld [vmem:[#allocation43_spill] sm:$0xff] }
 0x2ea   :  { %4041 = vst [vmem:[#allocation7_spill] sm:$0xff] %v3288_v29  ;;  %4042 = vst [vmem:[#allocation8_spill] sm:$0xff] %v3292_v22  ;;  %v3302_v40 = vpop.permute.xlu0 %1538  ;;  %v3304_v26 = vpop.permute.xlu1 %1470  ;;  %v3306_v3 = vadd.f32 %v682_v18, %v553_v23  ;;  %v788_v36 = vmul.f32 %v4052_v39, %v4051_v58  ;;  %v791_v55 = vmul.f32 %v4052_v39, %v4053_v30  ;;  %v4058_v23 = vld [vmem:[#allocation44_spill] sm:$0xff]  ;;  %v4059_v35 = vld [vmem:[#allocation45_spill] sm:$0xff] }
 0x2eb   :  { %4043 = vst [vmem:[#allocation9_spill] sm:$0xff] %v3294_v5  ;;  %4044 = vst [vmem:[#allocation11_spill] sm:$0xff] %v3296_v37  ;;  %v787_v59 = vmul.f32 %v4052_v39, %v4054_v16  ;;  %v793_v2 = vmul.f32 %v4052_v39, %v4055_v46  ;;  %v789_v4 = vmul.f32 %v4052_v39, %v4056_v49  ;;  %v4060_v38 = vld [vmem:[#allocation46_spill] sm:$0xff]  ;;  %v4061_v18 = vld [vmem:[#allocation47_spill] sm:$0xff] }
 0x2ec   :  { %4045 = vst [vmem:[#allocation83_spill] sm:$0xff] %v3298_v44  ;;  %4048 = vst [vmem:[#allocation12_spill] sm:$0xff] %v3302_v40  ;;  %v795_v62 = vmul.f32 %v4052_v39, %v4057_v28  ;;  %v790_v33 = vmul.f32 %v4052_v39, %v4058_v23  ;;  %v797_v20 = vmul.f32 %v4052_v39, %v4059_v35  ;;  %v4062_v58 = vld [vmem:[#allocation59_spill] sm:$0xff]  ;;  %v4063_v16 = vld [vmem:[#allocation48_spill] sm:$0xff] }
 0x2ed   :  { %4049 = vst [vmem:[#allocation13_spill] sm:$0xff] %v3304_v26  ;;  %4050 = vst [vmem:[#allocation14_spill] sm:$0xff] %v3306_v3  ;;  %v792_v56 = vmul.f32 %v4052_v39, %v4060_v38  ;;  %v799_v0 = vmul.f32 %v4052_v39, %v4061_v18  ;;  %v920_v30 = vmul.f32 %v4047_v12, %v4062_v58  ;;  %v4064_v28 = vld [vmem:[#allocation60_spill] sm:$0xff]  ;;  %v4065_v29 = vld [vmem:[#allocation61_spill] sm:$0xff] }
 0x2ee   :  { %v3332_v46 = vmul.f32 %v4052_v39, %v4063_v16  ;;  %v1741_v49 = vadd.f32 %v917_v8, %v788_v36  ;;  %v922_v23 = vmul.f32 %v4047_v12, %v4064_v28  ;;  %v916_v35 = vmul.f32 %v4047_v12, %v4065_v29  ;;  %v3338_v11 = vpop.permute.xlu0 %1546  ;;  %v3340_v38 = vpop.permute.xlu1 %1478  ;;  %v4068_v26 = vld [vmem:[#allocation49_spill] sm:$0xff]  ;;  %v4069_v40 = vld [vmem:[#allocation50_spill] sm:$0xff]  ;;  %v4071_v16 = vld [vmem:[#allocation51_spill] sm:$0xff] }
 0x2ef   :  { %4066 = vst [vmem:[#allocation15_spill] sm:$0xff] %v3338_v11  ;;  %4067 = vst [vmem:[#allocation18_spill] sm:$0xff] %v3340_v38  ;;  %v801_v18 = vmul.f32 %v4052_v39, %v4068_v26  ;;  %v3346_v58 = vmul.f32 %v4052_v39, %v4069_v40  ;;  %v3350_v8 = vmul.f32 %v4052_v39, %v4071_v16  ;;  %v4072_v36 = vld [vmem:[#allocation62_spill] sm:$0xff]  ;;  %v4074_v11 = vld [vmem:[#allocation55_spill] sm:$0xff] }
 0x2f0   :  { %v924_v28 = vmul.f32 %v4047_v12, %v4072_v36  ;;  %v3356_v29 = vmul.f32 %v4052_v39, %v4073_v1  ;;  %v3360_v38 = vmul.f32 %v4052_v39, %v4074_v11  ;;  %v4075_v26 = vld [vmem:[#allocation56_spill] sm:$0xff]  ;;  %v4076_v40 = vld [vmem:[#allocation102_spill] sm:$0xff]  ;;  %v4077_v16 = vld [vmem:[#allocation57_spill] sm:$0xff]  ;;  %v1744_v36 = vadd.f32 %v920_v30, %v791_v55 }
 0x2f1   :  { %4070 = vst [vmem:[#allocation122_spill] sm:$0xff] %v3346_v58  ;;  %v3364_v6 = vmul.f32 %v4052_v39, %v4075_v26  ;;  %v1175_v58 = vmul.f32 %v2904_v10, %v4076_v40  ;;  %v3370_v25 = vmul.f32 %v4052_v39, %v4077_v16  ;;  %v918_v1 = vmul.f32 %v4047_v12, %v4078_v34  ;;  %v4080_v26 = vld [vmem:[#allocation80_spill] sm:$0xff]  ;;  %v4082_v39 = vld [vmem:[#allocation65_spill] sm:$0xff]  ;;  %v4083_v30 = vld [vmem:[#allocation66_spill] sm:$0xff] }
 0x2f2   :  { %v926_v3 = vmul.f32 %v4047_v12, %v4079_v21  ;;  %v1841_v11 = vadd.f32 %v1741_v49, %v3222_v41  ;;  %v1746_v44 = vadd.f32 %v922_v23, %v793_v2  ;;  %v1740_v43 = vadd.f32 %v916_v35, %v787_v59  ;;  %v3379_v5 = vpop.permute.xlu0 %1554  ;;  %v3381_v40 = vpop.permute.xlu1 %1486  ;;  %v4084_v22 = vld [vmem:[#allocation67_spill] sm:$0xff] }
 0x2f3   :  { %v1046_v37 = vmul.f32 %v2899_v50, %v4080_v26  ;;  %4081 = vst [vmem:[#allocation19_spill] sm:$0xff] %v3381_v40  ;;  %v1748_v16 = vadd.f32 %v924_v28, %v795_v62  ;;  %v919_v55 = vmul.f32 %v4047_v12, %v4082_v39  ;;  %v928_v34 = vmul.f32 %v4047_v12, %v4083_v30  ;;  %v4085_v2 = vld [vmem:[#allocation103_spill] sm:$0xff]  ;;  %v4088_v30 = vld [vmem:[#allocation68_spill] sm:$0xff] }
 0x2f4   :  { %v921_v21 = vmul.f32 %v4047_v12, %v4084_v22  ;;  %v1178_v59 = vmul.f32 %v2904_v10, %v4085_v2  ;;  %v4086_v49 = vsub.s32 3, %v2166_v48  ;;  %v4087_v62 = vsub.s32 4, %v2166_v48  ;;  %v4089_v2 = vld [vmem:[#allocation82_spill] sm:$0xff] }
 0x2f5   :  { %v1766_v41 = vadd.f32 %v1175_v58, %v1046_v37  ;;  %v1844_v39 = vadd.f32 %v1744_v36, %v3258_v54  ;;  %v1742_v28 = vadd.f32 %v918_v1, %v789_v4  ;;  %v1750_v26 = vadd.f32 %v926_v3, %v797_v20  ;;  %v4090_v1 = vld [vmem:[#allocation104_spill] sm:$0xff] }
 0x2f6   :  { %v3394_v23 = vrot.slane %v2889_v42, %v4086_v49  ;;  %v3399_v35 = vrot.slane %v2889_v42, %v4087_v62  ;;  %v930_v22 = vmul.f32 %v4047_v12, %v4088_v30  ;;  %v1846_v37 = vadd.f32 %v1746_v44, %v3272_v14  ;;  %v3411_v40 = vpop.permute.xlu1 %1494  ;;  %v4094_v30 = vld [vmem:[#allocation86_spill] sm:$0xff] }
 0x2f7   :  { %v3406_v58 = vadd.f32 %v1740_v43, %v3224_v7  ;;  %v1049_v49 = vmul.f32 %v2899_v50, %v4089_v2  ;;  %v1866_v48 = vadd.f32 %v3009_v45, %v1766_v41  ;;  %v3414_v42 = vadd.f32 %v1748_v16, %v3278_v13  ;;  %v1592_v20 = vpop.permute.xlu0 %1591 }
 0x2f8   :  { %v1743_v54 = vadd.f32 %v919_v55, %v790_v33  ;;  %v1752_v3 = vadd.f32 %v928_v34, %v799_v0  ;;  %v1745_v4 = vadd.f32 %v921_v21, %v792_v56  ;;  %v1180_v14 = vmul.f32 %v2904_v10, %v4090_v1  ;;  %v4091_v33 = vld [vmem:[#allocation69_spill] sm:$0xff]  ;;  %v4092_v0 = vld [vmem:[#allocation84_spill] sm:$0xff] }
 0x2f9   :  { %v1769_v36 = vadd.f32 %v1178_v59, %v1049_v49  ;;  %v1562_v7 = vmul.f32 %v3394_v23, %v3120_v31  ;;  %v1691_v43 = vmul.f32 %v3399_v35, %v1592_v20  ;;  %v3422_v45 = vadd.f32 %v1742_v28, %v3270_v63  ;;  %v4097_v20 = vld [vmem:[#allocation74_spill] sm:$0xff] }
 0x2fa   :  { %v3425_v44 = vadd.f32 %v1750_v26, %v3282_v47  ;;  %v1754_v13 = vadd.f32 %v930_v22, %v801_v18  ;;  %v923_v56 = vmul.f32 %v4047_v12, %v4091_v33  ;;  %v1051_v16 = vmul.f32 %v2899_v50, %v4092_v0  ;;  %v3432_v31 = vpop.permute.xlu1 %1502  ;;  %v4093_v18 = vld [vmem:[#allocation105_spill] sm:$0xff]  ;;  %v4099_v33 = vld [vmem:[#allocation78_spill] sm:$0xff]  ;;  %v4100_v0 = vld [vmem:[#allocation79_spill] sm:$0xff] }
 0x2fb   :  { %v1869_v55 = vadd.f32 %v3018_v52, %v1769_v36  ;;  %v1891_v34 = vadd.f32 %v1866_v48, %v1841_v11  ;;  %v1816_v21 = vadd.f32 %v1691_v43, %v1562_v7  ;;  %v3435_v41 = vadd.f32 %v1743_v54, %v3274_v15  ;;  %v1604_v62 = vpop.permute.xlu0 %1603 }
 0x2fc   :  { %v3438_v63 = vadd.f32 %v1752_v3, %v3286_v19  ;;  %v3441_v47 = vadd.f32 %v1745_v4, %v3280_v24  ;;  %v1182_v59 = vmul.f32 %v2904_v10, %v4093_v18  ;;  %v1771_v28 = vadd.f32 %v1180_v14, %v1051_v16  ;;  %v4096_v4 = vld [vmem:[#allocation72_spill] sm:$0xff]  ;;  %v4098_v14 = vld [vmem:[#allocation106_spill] sm:$0xff] }
 0x2fd   :  { %v1565_v52 = vmul.f32 %v3394_v23, %v3128_v61  ;;  %v1916_v11 = vadd.f32 %v1891_v34, %v1816_v21  ;;  %v1694_v26 = vmul.f32 %v3399_v35, %v1604_v62  ;;  %v3449_v15 = vadd.f32 %v1754_v13, %v3290_v60  ;;  %v4095_v61 = vld [vmem:[#allocation70_spill] sm:$0xff] }
 0x2fe   :  { %v1747_v19 = vadd.f32 %v923_v56, %v3332_v46  ;;  %v1053_v24 = vmul.f32 %v2899_v50, %v4094_v30  ;;  %v1871_v22 = vadd.f32 %v3027_v32, %v1771_v28  ;;  %v1894_v49 = vadd.f32 %v1869_v55, %v1844_v39  ;;  %v3456_v54 = vpop.permute.xlu1 %1510  ;;  %v4101_v55 = vld [vmem:[#allocation88_spill] sm:$0xff] }
 0x2ff   :  { %v1945_v2 = vadd.f32 %v3158_v53, %v1916_v11  ;;  %v1819_v48 = vadd.f32 %v1694_v26, %v1565_v52  ;;  %v932_v3 = vmul.f32 %v4047_v12, %v4095_v61  ;;  %v934_v60 = vmul.f32 %v4047_v12, %v4096_v4  ;;  %v1612_v1 = vpop.permute.xlu0 %1611  ;;  %v4102_v11 = vld [vmem:[#allocation108_spill] sm:$0xff] }
 0x300   :  { %v936_v46 = vmul.f32 %v4047_v12, %v4097_v20  ;;  %v1773_v36 = vadd.f32 %v1182_v59, %v1053_v24  ;;  %v1184_v32 = vmul.f32 %v2904_v10, %v4098_v14  ;;  %v1567_v39 = vmul.f32 %v3394_v23, %v3135_v51  ;;  %v4103_v24 = vld [vmem:[#allocation71_spill] sm:$0xff] }
 0x301   :  { %1971 = vst.msk [vmem:[%s3826_s2 + $0x8] sm:$0xff] %vm1969_vm0, %v1945_v2  ;;  %v1919_v7 = vadd.f32 %v1894_v49, %v1819_v48  ;;  %v1696_v43 = vmul.f32 %v3399_v35, %v1612_v1  ;;  %v3474_v13 = vadd.f32 %v1747_v19, %v3284_v27  ;;  %v938_v56 = vmul.f32 %v4047_v12, %v4099_v33  ;;  %v4104_v2 = vld [vmem:[#allocation90_spill] sm:$0xff]  ;;  %v4110_v33 = vld [vmem:[#allocation83_spill] sm:$0xff] }
 0x302   :  { %v940_v16 = vmul.f32 %v4047_v12, %v4100_v0  ;;  %v1055_v51 = vmul.f32 %v2899_v50, %v4101_v55  ;;  %v1873_v34 = vadd.f32 %v3036_v57, %v1773_v36  ;;  %v1896_v18 = vadd.f32 %v1871_v22, %v1846_v37  ;;  %v3484_v62 = vpop.permute.xlu1 %1518  ;;  %v4111_v0 = vld [vmem:[#allocation14_spill] sm:$0xff]  ;;  %v4112_v55 = vld [vmem:[#allocation87_spill] sm:$0xff] }
 0x303   :  { %v1948_v21 = vadd.f32 %v3158_v53, %v1919_v7  ;;  %v1821_v59 = vadd.f32 %v1696_v43, %v1567_v39  ;;  %v1756_v27 = vadd.f32 %v932_v3, %v3350_v8  ;;  %v1758_v28 = vadd.f32 %v934_v60, %v3356_v29  ;;  %v1620_v19 = vpop.permute.xlu0 %1619  ;;  %v4105_v60 = vld [vmem:[#allocation8_spill] sm:$0xff] }
 0x304   :  { %v1760_v52 = vadd.f32 %v936_v46, %v3360_v38  ;;  %v1186_v26 = vmul.f32 %v2904_v10, %v4102_v11  ;;  %v1775_v30 = vadd.f32 %v1184_v32, %v1055_v51  ;;  %v1569_v57 = vmul.f32 %v3394_v23, %v3141_v9  ;;  %v4106_v46 = vld [vmem:[#allocation9_spill] sm:$0xff]  ;;  %v4108_v32 = vld [vmem:[#allocation110_spill] sm:$0xff]  ;;  %v4109_v39 = vld [vmem:[#allocation144_spill] sm:$0xff] }
 0x305   :  { %1974 = vst.msk [vmem:[%s3826_s2 + $0x20] sm:$0xff] %vm1969_vm0, %v1948_v21  ;;  %v1921_v37 = vadd.f32 %v1896_v18, %v1821_v59  ;;  %v1698_v8 = vmul.f32 %v3399_v35, %v1620_v19  ;;  %v3500_v29 = vmul.f32 %v4047_v12, %v4103_v24  ;;  %v1762_v38 = vadd.f32 %v938_v56, %v3364_v6  ;;  %v4107_v6 = vld [vmem:[#allocation11_spill] sm:$0xff]  ;;  %v4114_v18 = vld [vmem:[#allocation128_spill] sm:$0xff] }
 0x306   :  { %v1764_v22 = vadd.f32 %v940_v16, %v3370_v25  ;;  %v1057_v49 = vmul.f32 %v2899_v50, %v4104_v2  ;;  %v1875_v9 = vadd.f32 %v3045_v17, %v1775_v30  ;;  %v1898_v61 = vadd.f32 %v1873_v34, %v3414_v42  ;;  %v3509_v4 = vpop.permute.xlu1 %1526  ;;  %v4113_v34 = vld [vmem:[#allocation92_spill] sm:$0xff]  ;;  %v4116_v30 = vld [vmem:[#allocation91_spill] sm:$0xff] }
 0x307   :  { %v1950_v48 = vadd.f32 %v3158_v53, %v1921_v37  ;;  %v1823_v3 = vadd.f32 %v1698_v8, %v1569_v57  ;;  %v3512_v20 = vadd.f32 %v1756_v27, %v4105_v60  ;;  %v3515_v36 = vadd.f32 %v1758_v28, %v4106_v46  ;;  %v1628_v14 = vpop.permute.xlu0 %1627  ;;  %v4117_v37 = vld [vmem:[#allocation93_spill] sm:$0xff]  ;;  %v4118_v24 = vld [vmem:[#allocation112_spill] sm:$0xff] }
 0x308   :  { %v3518_v25 = vadd.f32 %v1760_v52, %v4107_v6  ;;  %v1777_v1 = vadd.f32 %v1186_v26, %v1057_v49  ;;  %v1188_v17 = vmul.f32 %v2904_v10, %v4108_v32  ;;  %v1571_v42 = vmul.f32 %v3394_v23, %v4109_v39  ;;  %v4115_v26 = vld [vmem:[#allocation89_spill] sm:$0xff]  ;;  %v4119_v49 = vld [vmem:[#allocation146_spill] sm:$0xff]  ;;  %v4121_v60 = vld [vmem:[#allocation96_spill] sm:$0xff] }
 0x309   :  { %1976 = vst.msk [vmem:[%s3826_s2 + $0x30] sm:$0xff] %vm1969_vm0, %v1950_v48  ;;  %v1923_v7 = vadd.f32 %v1898_v61, %v1823_v3  ;;  %v1700_v43 = vmul.f32 %v3399_v35, %v1628_v14  ;;  %v3530_v56 = vadd.f32 %v1762_v38, %v4110_v33  ;;  %v3533_v16 = vadd.f32 %v1764_v22, %v4111_v0  ;;  %v4120_v61 = vld [vmem:[#allocation94_spill] sm:$0xff]  ;;  %v4123_v14 = vld [vmem:[#allocation129_spill] sm:$0xff]  ;;  %v4124_v32 = vld [vmem:[#allocation127_spill] sm:$0xff] }
 0x30a   :  { %v1045_v51 = vmul.f32 %v2899_v50, %v4112_v55  ;;  %v1059_v21 = vmul.f32 %v2899_v50, %v4113_v34  ;;  %v1877_v59 = vadd.f32 %v4114_v18, %v1777_v1  ;;  %v1900_v28 = vadd.f32 %v1875_v9, %v3425_v44  ;;  %v3542_v11 = vpop.permute.xlu1 %1534  ;;  %v4122_v6 = vld [vmem:[#allocation98_spill] sm:$0xff]  ;;  %v4126_v55 = vld [vmem:[#allocation107_spill] sm:$0xff] }
 0x30b   :  { %v1952_v27 = vadd.f32 %v3158_v53, %v1923_v7  ;;  %v1825_v52 = vadd.f32 %v1700_v43, %v1571_v42  ;;  %v1047_v19 = vmul.f32 %v2899_v50, %v4115_v26  ;;  %v1048_v57 = vmul.f32 %v2899_v50, %v4116_v30  ;;  %v1636_v22 = vpop.permute.xlu0 %1635  ;;  %v4125_v39 = vld [vmem:[#allocation130_spill] sm:$0xff] }
 0x30c   :  { %v3550_v8 = vmul.f32 %v2899_v50, %v4117_v37  ;;  %v1190_v38 = vmul.f32 %v2904_v10, %v4118_v24  ;;  %v1779_v2 = vadd.f32 %v1188_v17, %v1059_v21  ;;  %v1573_v44 = vmul.f32 %v3394_v23, %v4119_v49  ;;  %v4127_v21 = vld [vmem:[#allocation109_spill] sm:$0xff]  ;;  %v4130_v37 = vld [vmem:[#allocation114_spill] sm:$0xff]  ;;  %v4132_v49 = vld [vmem:[#allocation100_spill] sm:$0xff] }
 0x30d   :  { %1978 = vst.msk [vmem:[%s3826_s2 + $0x40] sm:$0xff] %vm1969_vm0, %v1952_v27  ;;  %v1925_v9 = vadd.f32 %v1900_v28, %v1825_v52  ;;  %v1702_v48 = vmul.f32 %v3399_v35, %v1636_v22  ;;  %v1061_v3 = vmul.f32 %v2899_v50, %v4120_v61  ;;  %v1063_v46 = vmul.f32 %v2899_v50, %v4121_v60  ;;  %v4128_v28 = vld [vmem:[#allocation123_spill] sm:$0xff]  ;;  %v4129_v52 = vld [vmem:[#allocation126_spill] sm:$0xff]  ;;  %v4135_v60 = vld [vmem:[#allocation132_spill] sm:$0xff] }
 0x30e   :  { %v1065_v1 = vmul.f32 %v2899_v50, %v4122_v6  ;;  %v1432_v17 = vmul.f32 %v4124_v32, %v4123_v14  ;;  %v1879_v42 = vadd.f32 %v4125_v39, %v1779_v2  ;;  %v1902_v43 = vadd.f32 %v1877_v59, %v3438_v63  ;;  %v3572_v0 = vpop.permute.xlu1 %1542  ;;  %v4131_v22 = vld [vmem:[#allocation2_spill] sm:$0xff]  ;;  %v4134_v61 = vld [vmem:[#allocation131_spill] sm:$0xff] }
 0x30f   :  { %v1954_v7 = vadd.f32 %v3158_v53, %v1925_v9  ;;  %v1827_v33 = vadd.f32 %v1702_v48, %v1573_v44  ;;  %v1174_v34 = vmul.f32 %v2904_v10, %v4126_v55  ;;  %v1176_v18 = vmul.f32 %v2904_v10, %v4127_v21  ;;  %v1644_v30 = vpop.permute.xlu0 %1643  ;;  %v4133_v44 = vld [vmem:[#allocation111_spill] sm:$0xff]  ;;  %v4136_v21 = vld [vmem:[#allocation116_spill] sm:$0xff] }
 0x310   :  { %v1781_v27 = vadd.f32 %v1190_v38, %v1061_v3  ;;  %v1303_v26 = vmul.f32 %v4129_v52, %v4128_v28  ;;  %v1192_v24 = vmul.f32 %v2904_v10, %v4130_v37  ;;  %v1575_v63 = vmul.f32 %v3394_v23, %v4131_v22  ;;  %v4138_v22 = vld [vmem:[#allocation16_spill] sm:$0xff] }
 0x311   :  { %1980 = vst.msk [vmem:[%s3826_s2 + $0x50] sm:$0xff] %vm1969_vm0, %v1954_v7  ;;  %v1927_v59 = vadd.f32 %v1902_v43, %v1827_v33  ;;  %v1704_v2 = vmul.f32 %v3399_v35, %v1644_v30  ;;  %v1067_v38 = vmul.f32 %v2899_v50, %v4132_v49  ;;  %v1177_v9 = vmul.f32 %v2904_v10, %v4133_v44  ;;  %v4137_v30 = vld [vmem:[#allocation124_spill] sm:$0xff] }
 0x312   :  { %v1790_v48 = vadd.f32 %v1432_v17, %v1303_v26  ;;  %v1434_v3 = vmul.f32 %v4124_v32, %v4134_v61  ;;  %v1881_v6 = vadd.f32 %v4135_v60, %v1781_v27  ;;  %v1904_v39 = vadd.f32 %v1879_v42, %v3449_v15  ;;  %v3598_v43 = vpop.permute.xlu1 %1550  ;;  %v4141_v61 = vld [vmem:[#allocation118_spill] sm:$0xff] }
 0x313   :  { %v1956_v14 = vadd.f32 %v3158_v53, %v1927_v59  ;;  %v1829_v7 = vadd.f32 %v1704_v2, %v1575_v63  ;;  %v1765_v33 = vadd.f32 %v1174_v34, %v1045_v51  ;;  %v1767_v55 = vadd.f32 %v1176_v18, %v1047_v19  ;;  %v1652_v26 = vpop.permute.xlu0 %1651  ;;  %v4139_v18 = vld [vmem:[#allocation133_spill] sm:$0xff]  ;;  %v4140_v59 = vld [vmem:[#allocation134_spill] sm:$0xff] }
 0x314   :  { %v1194_v28 = vmul.f32 %v2904_v10, %v4136_v21  ;;  %v1305_v17 = vmul.f32 %v4129_v52, %v4137_v30  ;;  %v1783_v37 = vadd.f32 %v1192_v24, %v1063_v46  ;;  %v1577_v27 = vmul.f32 %v3394_v23, %v4138_v22  ;;  %v4145_v21 = vld [vmem:[#allocation135_spill] sm:$0xff] }
 0x315   :  { %1982 = vst.msk [vmem:[%s3826_s2 + $0x60] sm:$0xff] %vm1969_vm0, %v1956_v14  ;;  %v1929_v15 = vadd.f32 %v1904_v39, %v1829_v7  ;;  %v1706_v51 = vmul.f32 %v3399_v35, %v1652_v26  ;;  %v1768_v19 = vadd.f32 %v1177_v9, %v1048_v57  ;;  %v1865_v42 = vadd.f32 %v1790_v48, %v1765_v33  ;;  %v4142_v14 = vld [vmem:[#allocation125_spill] sm:$0xff] }
 0x316   :  { %v1792_v34 = vadd.f32 %v1434_v3, %v1305_v17  ;;  %v1435_v63 = vmul.f32 %v4124_v32, %v4139_v18  ;;  %v1883_v2 = vadd.f32 %v4140_v59, %v1783_v37  ;;  %v1906_v24 = vadd.f32 %v1881_v6, %v3512_v20  ;;  %v4143_v57 = vld [vmem:[#allocation17_spill] sm:$0xff]  ;;  %v4147_v18 = vld [vmem:[#allocation6_spill] sm:$0xff] }
 0x317   :  { %v1958_v46 = vadd.f32 %v3158_v53, %v1929_v15  ;;  %v1831_v49 = vadd.f32 %v1706_v51, %v1577_v27  ;;  %v1785_v44 = vadd.f32 %v1194_v28, %v1065_v1  ;;  %v1196_v60 = vmul.f32 %v2904_v10, %v4141_v61  ;;  %v1660_v48 = vpop.permute.xlu0 %1659  ;;  %v1588_v3 = vpop.permute.xlu1 %1587  ;;  %v4144_v32 = vld [vmem:[#allocation5_spill] sm:$0xff] }
 0x318   :  { %v1306_v39 = vmul.f32 %v4129_v52, %v4142_v14  ;;  %v1561_v9 = vmul.f32 %v3394_v23, %v4143_v57  ;;  %v1579_v7 = vmul.f32 %v3394_v23, %v4144_v32  ;;  %v1708_v1 = vmul.f32 %v3399_v35, %v1660_v48  ;;  %v4146_v27 = vld [vmem:[#allocation113_spill] sm:$0xff]  ;;  %v4150_v48 = vld [vmem:[#allocation115_spill] sm:$0xff] }
 0x319   :  { %1984 = vst.msk [vmem:[%s3826_s2 + $0x70] sm:$0xff] %vm1969_vm0, %v1958_v46  ;;  %v1931_v20 = vadd.f32 %v1906_v24, %v1831_v49  ;;  %v1690_v6 = vmul.f32 %v3399_v35, %v1588_v3  ;;  %v1867_v33 = vadd.f32 %v1792_v34, %v1767_v55  ;;  %v1885_v28 = vadd.f32 %v4145_v21, %v1785_v44  ;;  %v4148_v46 = vld [vmem:[#allocation12_spill] sm:$0xff]  ;;  %v4149_v24 = vld [vmem:[#allocation137_spill] sm:$0xff] }
 0x31a   :  { %v1793_v52 = vadd.f32 %v1435_v63, %v1306_v39  ;;  %v1890_v30 = vadd.f32 %v1865_v42, %v3406_v58  ;;  %v1908_v26 = vadd.f32 %v1883_v2, %v3515_v36  ;;  %v1833_v37 = vadd.f32 %v1708_v1, %v1579_v7  ;;  %v4151_v32 = vld [vmem:[#allocation13_spill] sm:$0xff]  ;;  %v4152_v7 = vld [vmem:[#allocation15_spill] sm:$0xff] }
 0x31b   :  { %v1960_v17 = vadd.f32 %v3158_v53, %v1931_v20  ;;  %v1815_v22 = vadd.f32 %v1690_v6, %v1561_v9  ;;  %v1179_v15 = vmul.f32 %v2904_v10, %v4146_v27  ;;  %v1787_v51 = vadd.f32 %v1196_v60, %v1067_v38  ;;  %v1668_v34 = vpop.permute.xlu0 %1667  ;;  %v1596_v63 = vpop.permute.xlu1 %1595 }
 0x31c   :  { %v1563_v59 = vmul.f32 %v3394_v23, %v4147_v18  ;;  %v1581_v55 = vmul.f32 %v3394_v23, %v4148_v46  ;;  %v1933_v58 = vadd.f32 %v1908_v26, %v1833_v37  ;;  %v1710_v42 = vmul.f32 %v3399_v35, %v1668_v34  ;;  %v4155_v18 = vld [vmem:[#allocation117_spill] sm:$0xff]  ;;  %v4156_v46 = vld [vmem:[#allocation18_spill] sm:$0xff] }
 0x31d   :  { %1986 = vst.msk [vmem:[%s3826_s2 + $0x80] sm:$0xff] %vm1969_vm0, %v1960_v17  ;;  %v1915_v36 = vadd.f32 %v1890_v30, %v1815_v22  ;;  %v1692_v2 = vmul.f32 %v3399_v35, %v1596_v63  ;;  %v1868_v38 = vadd.f32 %v1793_v52, %v1768_v19  ;;  %v1887_v49 = vadd.f32 %v4149_v24, %v1787_v51  ;;  %v4153_v52 = vld [vmem:[#allocation95_spill] sm:$0xff] }
 0x31e   :  { %v1910_v44 = vadd.f32 %v1885_v28, %v3518_v25  ;;  %v1892_v61 = vadd.f32 %v1867_v33, %v3422_v45  ;;  %v1962_v60 = vadd.f32 %v3158_v53, %v1933_v58  ;;  %v1835_v39 = vadd.f32 %v1710_v42, %v1581_v55  ;;  %v4154_v28 = vld [vmem:[#allocation136_spill] sm:$0xff] }
 0x31f   :  { %v1944_v14 = vadd.f32 %v3158_v53, %v1915_v36  ;;  %v1817_v57 = vadd.f32 %v1692_v2, %v1563_v59  ;;  %v1770_v9 = vadd.f32 %v1179_v15, %v3550_v8  ;;  %v1181_v3 = vmul.f32 %v2904_v10, %v4150_v48  ;;  %v1676_v25 = vpop.permute.xlu0 %1675  ;;  %v1600_v1 = vpop.permute.xlu1 %1599  ;;  %v4157_v2 = vld [vmem:[#allocation97_spill] sm:$0xff] }
 0x320   :  { %v1564_v19 = vmul.f32 %v3394_v23, %v4151_v32  ;;  %v1583_v20 = vmul.f32 %v3394_v23, %v4152_v7  ;;  %1988 = vst.msk [vmem:[%s3826_s2 + $0x90] sm:$0xff] %vm1969_vm0, %v1962_v60  ;;  %v1935_v45 = vadd.f32 %v1910_v44, %v1835_v39  ;;  %v1712_v6 = vmul.f32 %v3399_v35, %v1676_v25  ;;  %v4162_v7 = vld [vmem:[#allocation119_spill] sm:$0xff] }
 0x321   :  { %1970 = vst.msk [vmem:[%s3826_s2] sm:$0xff] %vm1969_vm0, %v1944_v14  ;;  %v1917_v8 = vadd.f32 %v1892_v61, %v1817_v57  ;;  %v1693_v33 = vmul.f32 %v3399_v35, %v1600_v1  ;;  %v1052_v21 = vmul.f32 %v2899_v50, %v4153_v52  ;;  %v1870_v30 = vadd.f32 %v4154_v28, %v1770_v9  ;;  %v4160_v9 = vld [vmem:[#allocation122_spill] sm:$0xff]  ;;  %v4166_v52 = vld [vmem:[#allocation52_spill] sm:$0xff] }
 0x322   :  { %v1912_v17 = vadd.f32 %v1887_v49, %v3530_v56  ;;  %v1893_v26 = vadd.f32 %v1868_v38, %v3435_v41  ;;  %v1964_v37 = vadd.f32 %v3158_v53, %v1935_v45  ;;  %v1837_v27 = vadd.f32 %v1712_v6, %v1583_v20  ;;  %v4158_v38 = vld [vmem:[#allocation138_spill] sm:$0xff]  ;;  %v4159_v49 = vld [vmem:[#allocation140_spill] sm:$0xff]  ;;  %v4165_v6 = vld [vmem:[#allocation33_spill] sm:$0xff] }
 0x323   :  { %v1946_v22 = vadd.f32 %v3158_v53, %v1917_v8  ;;  %v1818_v15 = vadd.f32 %v1693_v33, %v1564_v19  ;;  %v1772_v51 = vadd.f32 %v1181_v3, %v1052_v21  ;;  %v1183_v59 = vmul.f32 %v2904_v10, %v4155_v18  ;;  %v1684_v63 = vpop.permute.xlu0 %1683  ;;  %v1608_v56 = vpop.permute.xlu1 %1607  ;;  %v4161_v3 = vld [vmem:[#allocation73_spill] sm:$0xff]  ;;  %v4167_v21 = vld [vmem:[#allocation76_spill] sm:$0xff]  ;;  %v4170_v18 = vld [vmem:[#allocation7_spill] sm:$0xff] }
 0x324   :  { %v1566_v55 = vmul.f32 %v3394_v23, %v4156_v46  ;;  %v1585_v34 = vmul.f32 %v3394_v23, %v3379_v5  ;;  %1990 = vst.msk [vmem:[%s3826_s2 + $0xa0] sm:$0xff] %vm1969_vm0, %v1964_v37  ;;  %v1937_v41 = vadd.f32 %v1912_v17, %v1837_v27  ;;  %v1714_v36 = vmul.f32 %v3399_v35, %v1684_v63  ;;  %v4164_v8 = vld [vmem:[#allocation29_spill] sm:$0xff]  ;;  %v4169_v37 = vld [vmem:[#allocation139_spill] sm:$0xff] }
 0x325   :  { %1972 = vst.msk [vmem:[%s3826_s2 + $0x10] sm:$0xff] %vm1969_vm0, %v1946_v22  ;;  %v1918_v58 = vadd.f32 %v1893_v26, %v1818_v15  ;;  %v1695_v42 = vmul.f32 %v3399_v35, %v1608_v56  ;;  %v1054_v5 = vmul.f32 %v2899_v50, %v4157_v2  ;;  %v1872_v24 = vadd.f32 %v4158_v38, %v1772_v51  ;;  %v4175_v38 = vld [vmem:[#allocation54_spill] sm:$0xff] }
 0x326   :  { %v1914_v44 = vadd.f32 %v4159_v49, %v3533_v16  ;;  %v1895_v61 = vadd.f32 %v1870_v30, %v3441_v47  ;;  %v1966_v60 = vadd.f32 %v3158_v53, %v1937_v41  ;;  %v1839_v39 = vadd.f32 %v1714_v36, %v1585_v34  ;;  %v4163_v16 = vld [vmem:[#allocation19_spill] sm:$0xff]  ;;  %v4172_v41 = vld [vmem:[#allocation120_spill] sm:$0xff] }
 0x327   :  { %v1947_v14 = vadd.f32 %v3158_v53, %v1918_v58  ;;  %v1820_v57 = vadd.f32 %v1695_v42, %v1566_v55  ;;  %v1749_v48 = vadd.f32 %v3500_v29, %v4160_v9  ;;  %v927_v32 = vmul.f32 %v4047_v12, %v4161_v3  ;;  %v1616_v25 = vpop.permute.xlu1 %1615  ;;  %v4168_v30 = vld [vmem:[#allocation99_spill] sm:$0xff]  ;;  %v4179_v9 = vld [vmem:[#allocation32_spill] sm:$0xff] }
 0x328   :  { %v1774_v19 = vadd.f32 %v1183_v59, %v1054_v5  ;;  %v1185_v20 = vmul.f32 %v2904_v10, %v4162_v7  ;;  %v1568_v47 = vmul.f32 %v3394_v23, %v4163_v16  ;;  %1992 = vst.msk [vmem:[%s3826_s2 + $0xb0] sm:$0xff] %vm1969_vm0, %v1966_v60  ;;  %v1939_v29 = vadd.f32 %v1914_v44, %v1839_v39  ;;  %v4171_v55 = vld [vmem:[#allocation75_spill] sm:$0xff]  ;;  %v4177_v44 = vld [vmem:[#allocation141_spill] sm:$0xff] }
 0x329   :  { %1973 = vst.msk [vmem:[%s3826_s2 + $0x18] sm:$0xff] %vm1969_vm0, %v1947_v14  ;;  %v1920_v1 = vadd.f32 %v1895_v61, %v1820_v57  ;;  %v1697_v45 = vmul.f32 %v3399_v35, %v1616_v25  ;;  %v669_v33 = vmul.f32 %v4165_v6, %v4164_v8  ;;  %v798_v28 = vmul.f32 %v4167_v21, %v4166_v52  ;;  %v4173_v42 = vld [vmem:[#allocation3_spill] sm:$0xff]  ;;  %v4178_v57 = vld [vmem:[#allocation10_spill] sm:$0xff] }
 0x32a   :  { %v1056_v17 = vmul.f32 %v2899_v50, %v4168_v30  ;;  %v1897_v26 = vadd.f32 %v1872_v24, %v3474_v13  ;;  %v1874_v22 = vadd.f32 %v4169_v37, %v1774_v19  ;;  %v1968_v27 = vadd.f32 %v3158_v53, %v1939_v29  ;;  %v4174_v5 = vld [vmem:[#allocation31_spill] sm:$0xff]  ;;  %v4176_v24 = vld [vmem:[#allocation101_spill] sm:$0xff] }
 0x32b   :  { %v1949_v15 = vadd.f32 %v3158_v53, %v1920_v1  ;;  %v1822_v51 = vadd.f32 %v1697_v45, %v1568_v47  ;;  %v1849_v59 = vadd.f32 %v1749_v48, %v4170_v18  ;;  %v1751_v46 = vadd.f32 %v927_v32, %v798_v28  ;;  %v1624_v56 = vpop.permute.xlu1 %1623  ;;  %v4180_v47 = vld [vmem:[#allocation142_spill] sm:$0xff] }
 0x32c   :  { %v929_v34 = vmul.f32 %v4047_v12, %v4171_v55  ;;  %v1776_v63 = vadd.f32 %v1185_v20, %v1056_v17  ;;  %v1187_v58 = vmul.f32 %v2904_v10, %v4172_v41  ;;  %v1570_v13 = vmul.f32 %v3394_v23, %v3411_v40  ;;  %1994 = vst.msk [vmem:[%s3826_s2 + $0xc0] sm:$0xff] %vm1969_vm0, %v1968_v27 }
 0x32d   :  { %1975 = vst.msk [vmem:[%s3826_s2 + $0x28] sm:$0xff] %vm1969_vm0, %v1949_v15  ;;  %v1922_v36 = vadd.f32 %v1897_v26, %v1822_v51  ;;  %v1699_v12 = vmul.f32 %v3399_v35, %v1624_v56  ;;  %v1726_v2 = vadd.f32 %v669_v33, %v4173_v42  ;;  %v671_v10 = vmul.f32 %v4165_v6, %v4174_v5 }
 0x32e   :  { %v800_v40 = vmul.f32 %v4167_v21, %v4175_v38  ;;  %v1058_v49 = vmul.f32 %v2899_v50, %v4176_v24  ;;  %v1876_v61 = vadd.f32 %v4177_v44, %v1776_v63  ;;  %v1899_v14 = vadd.f32 %v1874_v22, %v1849_v59 }
 0x32f   :  { %v1951_v60 = vadd.f32 %v3158_v53, %v1922_v36  ;;  %v1824_v39 = vadd.f32 %v1699_v12, %v1570_v13  ;;  %v542_v48 = vmul.f32 %v4179_v9, %v4178_v57  ;;  %v1851_v3 = vadd.f32 %v1751_v46, %v1726_v2  ;;  %v1632_v19 = vpop.permute.xlu1 %1631 }
 0x330   :  { %v1753_v32 = vadd.f32 %v929_v34, %v800_v40  ;;  %v1778_v7 = vadd.f32 %v1187_v58, %v1058_v49  ;;  %v1572_v20 = vmul.f32 %v3394_v23, %v3432_v31  ;;  %v1701_v25 = vmul.f32 %v3399_v35, %v1632_v19 }
 0x331   :  { %1977 = vst.msk [vmem:[%s3826_s2 + $0x38] sm:$0xff] %vm1969_vm0, %v1951_v60  ;;  %v1924_v50 = vadd.f32 %v1899_v14, %v1824_v39  ;;  %v1728_v16 = vadd.f32 %v671_v10, %v542_v48  ;;  %v1901_v45 = vadd.f32 %v1876_v61, %v1851_v3  ;;  %v1574_v31 = vmul.f32 %v3394_v23, %v3456_v54  ;;  %v4185_v14 = vld [vmem:[#allocation121_spill] sm:$0xff] }
 0x332   :  { %v1878_v29 = vadd.f32 %v4180_v47, %v1778_v7  ;;  %v1826_v8 = vadd.f32 %v1701_v25, %v1572_v20  ;;  %v1576_v37 = vmul.f32 %v3394_v23, %v3484_v62  ;;  %v1578_v18 = vmul.f32 %v3394_v23, %v3509_v4  ;;  %v4181_v62 = vld [vmem:[#allocation143_spill] sm:$0xff]  ;;  %v4182_v4 = vld [vmem:[#allocation145_spill] sm:$0xff] }
 0x333   :  { %v1953_v1 = vadd.f32 %v3158_v53, %v1924_v50  ;;  %v1640_v6 = vpop.permute.xlu1 %1639  ;;  %v1853_v33 = vadd.f32 %v1753_v32, %v1728_v16  ;;  %v1580_v56 = vmul.f32 %v3394_v23, %v3542_v11  ;;  %v1582_v42 = vmul.f32 %v3394_v23, %v3572_v0  ;;  %v4183_v11 = vld [vmem:[#allocation81_spill] sm:$0xff]  ;;  %v4184_v0 = vld [vmem:[#allocation4_spill] sm:$0xff] }
 0x334   :  { %v1926_v52 = vadd.f32 %v1901_v45, %v1826_v8  ;;  %v1703_v21 = vmul.f32 %v3399_v35, %v1640_v6  ;;  %v1584_v24 = vmul.f32 %v3394_v23, %v3598_v43 }
 0x335   :  { %1979 = vst.msk [vmem:[%s3826_s2 + $0x48] sm:$0xff] %vm1969_vm0, %v1953_v1  ;;  %v1903_v30 = vadd.f32 %v1878_v29, %v1853_v33 }
 0x336   :  { %v1955_v28 = vadd.f32 %v3158_v53, %v1926_v52  ;;  %v1828_v17 = vadd.f32 %v1703_v21, %v1574_v31 }
 0x337   :  { %v1648_v26 = vpop.permute.xlu1 %1647 }
 0x338   :  { %1981 = vst.msk [vmem:[%s3826_s2 + $0x58] sm:$0xff] %vm1969_vm0, %v1955_v28  ;;  %v1928_v54 = vadd.f32 %v1903_v30, %v1828_v17  ;;  %v1705_v22 = vmul.f32 %v3399_v35, %v1648_v26 }
 0x33a   :  { %v1957_v27 = vadd.f32 %v3158_v53, %v1928_v54  ;;  %v1830_v15 = vadd.f32 %v1705_v22, %v1576_v37 }
 0x33b   :  { %v1656_v51 = vpop.permute.xlu1 %1655 }
 0x33c   :  { %1983 = vst.msk [vmem:[%s3826_s2 + $0x68] sm:$0xff] %vm1969_vm0, %v1957_v27  ;;  %v1930_v59 = vadd.f32 %v4181_v62, %v1830_v15  ;;  %v1707_v46 = vmul.f32 %v3399_v35, %v1656_v51 }
 0x33e   :  { %v1959_v55 = vadd.f32 %v3158_v53, %v1930_v59  ;;  %v1832_v34 = vadd.f32 %v1707_v46, %v1578_v18 }
 0x33f   :  { %v1664_v63 = vpop.permute.xlu1 %1663 }
 0x340   :  { %1985 = vst.msk [vmem:[%s3826_s2 + $0x78] sm:$0xff] %vm1969_vm0, %v1959_v55  ;;  %v1932_v41 = vadd.f32 %v4182_v4, %v1832_v34  ;;  %v1709_v58 = vmul.f32 %v3399_v35, %v1664_v63 }
 0x342   :  { %v1961_v13 = vadd.f32 %v3158_v53, %v1932_v41  ;;  %v1834_v36 = vadd.f32 %v1709_v58, %v1580_v56 }
 0x343   :  { %v1672_v12 = vpop.permute.xlu1 %1671 }
 0x344   :  { %1987 = vst.msk [vmem:[%s3826_s2 + $0x88] sm:$0xff] %vm1969_vm0, %v1961_v13  ;;  %v1934_v2 = vadd.f32 %v4183_v11, %v1834_v36  ;;  %v1711_v5 = vmul.f32 %v3399_v35, %v1672_v12 }
 0x346   :  { %v1963_v10 = vadd.f32 %v3158_v53, %v1934_v2  ;;  %v1836_v38 = vadd.f32 %v1711_v5, %v1582_v42 }
 0x347   :  { %v1680_v40 = vpop.permute.xlu1 %1679 }
 0x348   :  { %1989 = vst.msk [vmem:[%s3826_s2 + $0x98] sm:$0xff] %vm1969_vm0, %v1963_v10  ;;  %v1936_v49 = vadd.f32 %v4184_v0, %v1836_v38  ;;  %v1713_v44 = vmul.f32 %v3399_v35, %v1680_v40 }
 0x34a   :  { %v1965_v61 = vadd.f32 %v3158_v53, %v1936_v49  ;;  %v1838_v60 = vadd.f32 %v1713_v44, %v1584_v24 }
 0x34c   :  { %1991 = vst.msk [vmem:[%s3826_s2 + $0xa8] sm:$0xff] %vm1969_vm0, %v1965_v61  ;;  %v1938_v39 = vadd.f32 %v4185_v14, %v1838_v60 }
 0x34e   :  { %v1967_v23 = vadd.f32 %v3158_v53, %v1938_v39 }
 0x350   :  { %1993 = vst.msk [vmem:[%s3826_s2 + $0xb8] sm:$0xff] %vm1969_vm0, %v1967_v23 }

</bundles_post_ra>
